<compile_context>
chip_gen: v5e
topology: v5e:2x2
jax: 0.10.0
libtpu: 0.0.40
codegen_flags: <defaults>
</compile_context>

<pallas_src>
import jax
import jax.numpy as jnp
import numpy as np
from jax.experimental import pallas as pl
from jax.experimental.pallas import tpu as pltpu

LATENT_DIM = 8      # latentDim
FEATURE_DIM = 16    # featureDim
FEATURE_RED = 10    # feature_red (module default)
LATENT_RED = 100    # latent_red  (module default)

RP = 128            # latent_red padded to the 128-lane vreg width
GW = 3 * RP         # per-GRU fused gate width: [reset | update | candidate]
KF = 2 * RP         # fused matmul K: [x(128) | h(128)]


# ------------------------------- kernel --------------------------------------

def hf_kernel(
    x1_ref,                               # (1, BB, RP) f32: [ll|nl|feat|time|0...]
    h1_0_ref, h2_0_ref, h3_0_ref,         # (BB, RP) f32 initial hidden states
    w_ref,                                # (2*RP, 3*GW) bf16: fused [x|h] weights, 3 GRUs
    wc_ref,                               # (RP, 3*RP)  bf16: outhidden_to_candidate, 3 GRUs
    b_ref,                                # (1, 3*GW)   f32 : fused gate biases
    wo_ref, bo_ref,                       # (RP, RP) bf16 / (1, RP) f32 : LL_out
    out_ref,                              # (1, BB, LATENT_DIM) f32
    h1o_ref, h2o_ref, h3o_ref,            # (BB, RP) f32 : hidden-state carry + final output
):
    t = pl.program_id(1)

    @pl.when(t == 0)
    def _init():
        h1o_ref[...] = h1_0_ref[...]
        h2o_ref[...] = h2_0_ref[...]
        h3o_ref[...] = h3_0_ref[...]

    def gru(x, h, g):
        # Fused [x | h] projection: one K=256 bf16 matmul per GRU (f32 accumulate).
        xh = jnp.concatenate([x, h], axis=-1).astype(jnp.bfloat16)
        gi = (jnp.dot(xh, w_ref[:, g * GW:(g + 1) * GW],
                      preferred_element_type=jnp.float32)
              + b_ref[:, g * GW:(g + 1) * GW])
        r = jax.nn.sigmoid(gi[:, 0:RP])
        z = jax.nn.sigmoid(gi[:, RP:2 * RP])
        rh = (r * h).astype(jnp.bfloat16)
        c = jnp.tanh(gi[:, 2 * RP:3 * RP]
                     + jnp.dot(rh, wc_ref[:, g * RP:(g + 1) * RP],
                               preferred_element_type=jnp.float32))
        return (1.0 - z) * h + z * c

    out1 = gru(x1_ref[0], h1o_ref[...], 0)
    out2 = gru(out1, h2o_ref[...], 1)
    out3 = gru(out2 + out1, h3o_ref[...], 2)

    y = (jnp.dot(out3.astype(jnp.bfloat16), wo_ref[...],
                 preferred_element_type=jnp.float32) + bo_ref[...])
    out_ref[0] = y[:, 0:LATENT_DIM]          # only the 8 useful lanes hit HBM
    h1o_ref[...] = out1
    h2o_ref[...] = out2
    h3o_ref[...] = out3


# ------------------------------- wrapper --------------------------------------

def build_gru_input(feature, lastlatent, nextlatent, time, wf, bf):
    """Hoisted feature embedding + concat, batched over (B, T) in plain XLA.
    Returns the f32 GRU1 input sequence (B, T, 2*L + feature_red + 1)."""
    # TODO(synk): norm_feature / dropoutFeatureExt are not defined in the reference
    # source; norm_feature is treated as identity and dropout as a no-op (eval mode).
    feat = jnp.tanh(feature @ wf + bf)
    return jnp.concatenate([lastlatent, nextlatent, feat, time], axis=-1)


def _ceil(a, b):
    return -(-a // b)


@jax.jit
def high_frequency_forward_seq(inp_seq, h1, h2, h3, params):
    """Runs the full recurrence (T steps) in a single pallas_call.

    inp_seq:  (B, T, 2*latentDim + feature_red + 1) f32 (from build_gru_input)
    h1,h2,h3: (B, LATENT_RED)
    Returns (out_seq (B, T, LATENT_DIM), h1o, h2o, h3o each (B, LATENT_RED)).
    With T == 1 this is exactly HighFrequency.forward (composed with build_gru_input).
    """
    B, T, K_in = inp_seq.shape

    # ---- batch tiling: 2 blocks for megacore at medium B, 256 rows at large B ----
    if B < 16:
        BB = _ceil(B, 8) * 8
        pB = BB
    elif B <= 512:
        BB = _ceil(_ceil(B, 2), 8) * 8
        pB = 2 * BB
    else:
        BB = 256
        pB = _ceil(B, 256) * 256
    nb = pB // BB

    def pad_batch(x):
        return jnp.pad(x, ((0, pB - B),) + ((0, 0),) * (x.ndim - 1))

    # Lane-pad the GRU1 input block to 128, time-major.
    x1 = jnp.pad(inp_seq, ((0, 0), (0, 0), (0, RP - K_in)))
    x1 = jnp.transpose(pad_batch(x1), (1, 0, 2))                    # (T, pB, RP)

    def pad_hidden(h):
        return jnp.pad(pad_batch(h), ((0, 0), (0, RP - LATENT_RED)))  # (pB, RP)

    h1p, h2p, h3p = pad_hidden(h1), pad_hidden(h2), pad_hidden(h3)

    args = (x1, h1p, h2p, h3p,
            params['W'], params['WC'], params['B'], params['WO'], params['BO'])

    hid_spec = pl.BlockSpec((BB, RP), lambda b, t: (b, 0))

    def const_spec(a):
        return pl.BlockSpec(a.shape, lambda b, t: (0,) * a.ndim)

    in_specs = [pl.BlockSpec((1, BB, RP), lambda b, t: (t, b, 0)),
                hid_spec, hid_spec, hid_spec,
                const_spec(params['W']), const_spec(params['WC']),
                const_spec(params['B']), const_spec(params['WO']),
                const_spec(params['BO'])]

    out_shape = (
        jax.ShapeDtypeStruct((T, pB, LATENT_DIM), jnp.float32),
        jax.ShapeDtypeStruct((pB, RP), jnp.float32),
        jax.ShapeDtypeStruct((pB, RP), jnp.float32),
        jax.ShapeDtypeStruct((pB, RP), jnp.float32),
    )
    out_specs = (pl.BlockSpec((1, BB, LATENT_DIM), lambda b, t: (t, b, 0)),
                 hid_spec, hid_spec, hid_spec)

    out_seq, h1o, h2o, h3o = pl.pallas_call(
        hf_kernel,
        grid=(nb, T),
        in_specs=in_specs,
        out_specs=out_specs,
        out_shape=out_shape,
        compiler_params=pltpu.CompilerParams(
            dimension_semantics=("parallel", "arbitrary")),
    )(*args)

    out_seq = jnp.transpose(out_seq[:, :B, :], (1, 0, 2))           # (B, T, L)
    return (out_seq,
            h1o[:B, :LATENT_RED], h2o[:B, :LATENT_RED], h3o[:B, :LATENT_RED])


# ---------------------------- parameter setup ----------------------------------

def _linear(key, fan_in, fan_out):
    """torch.nn.Linear-style uniform init, weight stored as (in, out)."""
    bound = 1.0 / np.sqrt(fan_in)
    kw, kb = jax.random.split(key)
    w = jax.random.uniform(kw, (fan_in, fan_out), jnp.float32, -bound, bound)
    b = jax.random.uniform(kb, (1, fan_out), jnp.float32, -bound, bound)
    return w, b


def _gru_natural(key, in_size, hid):
    ks = jax.random.split(key, 6)
    wir, bir = _linear(ks[0], in_size, hid)   # input_to_reset
    wiu, biu = _linear(ks[1], in_size, hid)   # input_to_update
    wic, bic = _linear(ks[2], in_size, hid)   # input_to_candidate
    whr, bhr = _linear(ks[3], hid, hid)       # hidden_to_reset
    whu, bhu = _linear(ks[4], hid, hid)       # hidden_to_update
    whc, bhc = _linear(ks[5], hid, hid)       # outhidden_to_candidate
    return dict(wir=wir, bir=bir, wiu=wiu, biu=biu, wic=wic, bic=bic,
                whr=whr, bhr=bhr, whu=whu, bhu=bhu, whc=whc, bhc=bhc)


def init_natural_params(key):
    L, F, FR, R = LATENT_DIM, FEATURE_DIM, FEATURE_RED, LATENT_RED
    in1 = 2 * L + FR + 1
    ks = jax.random.split(key, 6)
    wf, bf = _linear(ks[0], F, FR)                   # LL_feature
    gru1 = _gru_natural(ks[1], in1, R)
    gru2 = _gru_natural(ks[2], R, R)
    gru3 = _gru_natural(ks[3], R, R)
    wo, bo = _linear(ks[4], R, L)                    # LL_out
    # LL_mid exists in __init__ but is unused in forward -> omitted.
    return dict(wf=wf, bf=bf, gru1=gru1, gru2=gru2, gru3=gru3, wo=wo, bo=bo)


def pack_params(nat):
    """Pack natural (torch-layout) params into padded, lane-aligned kernel slabs.

    Per GRU, the fused [x|h] weight is (256, 384): rows 0:128 = input weights
    (real rows at the top, zero-padded), rows 128:228 = hidden_to_{reset,update}
    (candidate column zero); the fused gate bias folds in both the input and
    hidden biases.  Padded rows/cols are zero so the math stays exact.
    Weights are stored in bf16 (matmul inputs), biases in f32 (added post-matmul)."""
    L, R = LATENT_DIM, LATENT_RED

    def fuse(gd):
        w = np.zeros((KF, GW), np.float32)
        b = np.zeros((1, GW), np.float32)
        gates = (('wir', 'bir', 'whr', 'bhr'),
                 ('wiu', 'biu', 'whu', 'bhu'),
                 ('wic', 'bic', None, 'bhc'))
        for g, (wk, bk, hk, hbk) in enumerate(gates):
            wi = np.asarray(gd[wk])                          # (in, R)
            w[0:wi.shape[0], g * RP:g * RP + R] = wi
            b[0, g * RP:g * RP + R] = (np.asarray(gd[bk])[0]
                                       + np.asarray(gd[hbk])[0])
            if hk is not None:                               # reset / update hidden path
                w[RP:RP + R, g * RP:g * RP + R] = np.asarray(gd[hk])
        wc = np.zeros((RP, RP), np.float32)
        wc[0:R, 0:R] = np.asarray(gd['whc'])
        return w, b, wc

    w1, b1, wc1 = fuse(nat['gru1'])
    w2, b2, wc2 = fuse(nat['gru2'])
    w3, b3, wc3 = fuse(nat['gru3'])

    W = np.concatenate([w1, w2, w3], axis=1)          # (256, 1152)
    WC = np.concatenate([wc1, wc2, wc3], axis=1)      # (128, 384)
    Bb = np.concatenate([b1, b2, b3], axis=1)         # (1, 1152)

    WO = np.zeros((RP, RP), np.float32)
    WO[0:R, 0:L] = np.asarray(nat['wo'])
    BO = np.zeros((1, RP), np.float32)
    BO[0, 0:L] = np.asarray(nat['bo'])[0]

    return dict(W=jnp.asarray(W, jnp.bfloat16),
                WC=jnp.asarray(WC, jnp.bfloat16),
                B=jnp.asarray(Bb, jnp.float32),
                WO=jnp.asarray(WO, jnp.bfloat16),
                BO=jnp.asarray(BO, jnp.float32))


# ------------------------- pure-JAX references ----------------------------------

def _maybe_bf16(x, use_bf16):
    return x.astype(jnp.bfloat16) if use_bf16 else x


def _gru_ref(x, h, gd, use_bf16):
    def mm(a, w):
        return jnp.dot(_maybe_bf16(a, use_bf16), _maybe_bf16(w, use_bf16),
                       preferred_element_type=jnp.float32)
    r = jax.nn.sigmoid(mm(x, gd['wir']) + gd['bir'] + mm(h, gd['whr']) + gd['bhr'])
    z = jax.nn.sigmoid(mm(x, gd['wiu']) + gd['biu'] + mm(h, gd['whu']) + gd['bhu'])
    c = jnp.tanh(mm(x, gd['wic']) + gd['bic'] + mm(r * h, gd['whc']) + gd['bhc'])
    return (1.0 - z) * h + z * c


def reference_seq(inp_seq, h1, h2, h3, nat, use_bf16=False):
    """Straightforward per-step implementation of the module's recurrence.
    With use_bf16=True it models the kernel's mixed-precision scheme
    (bf16 matmul operands, f32 accumulation / state)."""
    T = inp_seq.shape[1]
    outs = []
    for i in range(T):
        inp = inp_seq[:, i]
        out1 = _gru_ref(inp, h1, nat['gru1'], use_bf16)
        out2 = _gru_ref(out1, h2, nat['gru2'], use_bf16)
        out3 = _gru_ref(out2 + out1, h3, nat['gru3'], use_bf16)
        out = (jnp.dot(_maybe_bf16(out3, use_bf16), _maybe_bf16(nat['wo'], use_bf16),
                       preferred_element_type=jnp.float32) + nat['bo'])
        outs.append(out[:, None])
        h1, h2, h3 = out1, out2, out3
    return jnp.concatenate(outs, axis=1), h1, h2, h3


# ----------------------------------- test ---------------------------------------

if __name__ == "__main__":
    B, T = 2, 8
    key = jax.random.PRNGKey(0)
    kd, kp = jax.random.split(key)
    kfs = jax.random.split(kd, 7)
    feature = jax.random.normal(kfs[0], (B, T, FEATURE_DIM), jnp.float32)
    lastlatent = jax.random.normal(kfs[1], (B, T, LATENT_DIM), jnp.float32)
    nextlatent = jax.random.normal(kfs[2], (B, T, LATENT_DIM), jnp.float32)
    time = jax.random.uniform(kfs[3], (B, T, 1), jnp.float32)
    h1 = 2.0 * jax.random.normal(kfs[4], (B, LATENT_RED), jnp.float32)
    h2 = 2.0 * jax.random.normal(kfs[5], (B, LATENT_RED), jnp.float32)
    h3 = 2.0 * jax.random.normal(kfs[6], (B, LATENT_RED), jnp.float32)

    nat = init_natural_params(kp)
    params = pack_params(nat)

    # Hoisted feature embedding + concat (one batched XLA op), then the fused kernel.
    inp_seq = build_gru_input(feature, lastlatent, nextlatent, time,
                              nat['wf'], nat['bf'])
    outs = high_frequency_forward_seq(inp_seq, h1, h2, h3, params)
    outs = jax.block_until_ready(outs)

    # 1) Validate the kernel against a reference using the same bf16 mixed precision.
    refs_bf16 = reference_seq(inp_seq, h1, h2, h3, nat, use_bf16=True)
    for got, want in zip(outs, refs_bf16):
        np.testing.assert_allclose(np.asarray(got), np.asarray(want),
                                   rtol=5e-3, atol=5e-3)

    # 2) Loose sanity check against the full-f32 module semantics.
    refs_f32 = reference_seq(inp_seq, h1, h2, h3, nat, use_bf16=False)
    for got, want in zip(outs, refs_f32):
        np.testing.assert_allclose(np.asarray(got), np.asarray(want),
                                   rtol=1e-1, atol=1e-1)

    print("KERNEL_OK")
</pallas_src>

<mosaic_0001>
module attributes {stable_mosaic.version = 11 : i64} {
  func.func @hf_kernel(%arg0: i32, %arg1: i32, %arg2: memref<1x8x128xf32, #tpu.memory_space<vmem>>, %arg3: memref<8x128xf32, #tpu.memory_space<vmem>>, %arg4: memref<8x128xf32, #tpu.memory_space<vmem>>, %arg5: memref<8x128xf32, #tpu.memory_space<vmem>>, %arg6: memref<256x1152xbf16, #tpu.memory_space<vmem>>, %arg7: memref<128x384xbf16, #tpu.memory_space<vmem>>, %arg8: memref<1x1152xf32, #tpu.memory_space<vmem>>, %arg9: memref<128x128xbf16, #tpu.memory_space<vmem>>, %arg10: memref<1x128xf32, #tpu.memory_space<vmem>>, %arg11: memref<1x8x8xf32, #tpu.memory_space<vmem>>, %arg12: memref<8x128xf32, #tpu.memory_space<vmem>>, %arg13: memref<8x128xf32, #tpu.memory_space<vmem>>, %arg14: memref<8x128xf32, #tpu.memory_space<vmem>>) attributes {dimension_semantics = [#tpu.dimension_semantics<parallel>, #tpu.dimension_semantics<arbitrary>], iteration_bounds = array<i64: 1, 8>, scalar_prefetch = 0 : i64, scratch_operands = 0 : i64, tpu.core_type = #tpu.core_type<tc>, window_params = [{transform_indices = @transform_0, window_bounds = array<i64: 1, 8, 128>}, {transform_indices = @transform_1, window_bounds = array<i64: 8, 128>}, {transform_indices = @transform_2, window_bounds = array<i64: 8, 128>}, {transform_indices = @transform_3, window_bounds = array<i64: 8, 128>}, {pipeline_mode = #tpu.pipeline_mode<synchronous>, transform_indices = @transform_4, window_bounds = array<i64: 256, 1152>}, {pipeline_mode = #tpu.pipeline_mode<synchronous>, transform_indices = @transform_5, window_bounds = array<i64: 128, 384>}, {pipeline_mode = #tpu.pipeline_mode<synchronous>, transform_indices = @transform_6, window_bounds = array<i64: 1, 1152>}, {pipeline_mode = #tpu.pipeline_mode<synchronous>, transform_indices = @transform_7, window_bounds = array<i64: 128, 128>}, {pipeline_mode = #tpu.pipeline_mode<synchronous>, transform_indices = @transform_8, window_bounds = array<i64: 1, 128>}, {transform_indices = @transform_9, window_bounds = array<i64: 1, 8, 8>}, {transform_indices = @transform_10, window_bounds = array<i64: 8, 128>}, {transform_indices = @transform_11, window_bounds = array<i64: 8, 128>}, {transform_indices = @transform_12, window_bounds = array<i64: 8, 128>}]} {
    %c0_i32 = arith.constant 0 : i32
    %0 = arith.cmpi eq, %arg1, %c0_i32 : i32
    %1 = arith.extui %0 : i1 to i32
    %c0_i32_0 = arith.constant 0 : i32
    %2 = arith.cmpi ne, %1, %c0_i32_0 : i32
    scf.if %2 {
      %c0_51 = arith.constant 0 : index
      %c0_52 = arith.constant 0 : index
      %115 = vector.load %arg3[%c0_51, %c0_52] : memref<8x128xf32, #tpu.memory_space<vmem>>, vector<8x128xf32>
      %c0_53 = arith.constant 0 : index
      %c0_54 = arith.constant 0 : index
      %116 = vector.load %arg12[%c0_53, %c0_54] : memref<8x128xf32, #tpu.memory_space<vmem>>, vector<8x128xf32>
      tpu.vector_store %arg12[%c0_53, %c0_54], %115 {strides = array<i32>} : memref<8x128xf32, #tpu.memory_space<vmem>>, vector<8x128xf32>,
      %c0_55 = arith.constant 0 : index
      %c0_56 = arith.constant 0 : index
      %117 = vector.load %arg4[%c0_55, %c0_56] : memref<8x128xf32, #tpu.memory_space<vmem>>, vector<8x128xf32>
      %c0_57 = arith.constant 0 : index
      %c0_58 = arith.constant 0 : index
      %118 = vector.load %arg13[%c0_57, %c0_58] : memref<8x128xf32, #tpu.memory_space<vmem>>, vector<8x128xf32>
      tpu.vector_store %arg13[%c0_57, %c0_58], %117 {strides = array<i32>} : memref<8x128xf32, #tpu.memory_space<vmem>>, vector<8x128xf32>,
      %c0_59 = arith.constant 0 : index
      %c0_60 = arith.constant 0 : index
      %119 = vector.load %arg5[%c0_59, %c0_60] : memref<8x128xf32, #tpu.memory_space<vmem>>, vector<8x128xf32>
      %c0_61 = arith.constant 0 : index
      %c0_62 = arith.constant 0 : index
      %120 = vector.load %arg14[%c0_61, %c0_62] : memref<8x128xf32, #tpu.memory_space<vmem>>, vector<8x128xf32>
      tpu.vector_store %arg14[%c0_61, %c0_62], %119 {strides = array<i32>} : memref<8x128xf32, #tpu.memory_space<vmem>>, vector<8x128xf32>,
    } else {
    }
    %c0 = arith.constant 0 : index
    %c0_1 = arith.constant 0 : index
    %c0_2 = arith.constant 0 : index
    %3 = vector.load %arg2[%c0, %c0_1, %c0_2] : memref<1x8x128xf32, #tpu.memory_space<vmem>>, vector<1x8x128xf32>
    %4 = vector.shape_cast %3 : vector<1x8x128xf32> to vector<8x128xf32>
    %c0_3 = arith.constant 0 : index
    %c0_4 = arith.constant 0 : index
    %5 = vector.load %arg12[%c0_3, %c0_4] : memref<8x128xf32, #tpu.memory_space<vmem>>, vector<8x128xf32>
    %6 = tpu.concatenate %4, %5 in 1 : vector<8x128xf32>, vector<8x128xf32> -> vector<8x256xf32>
    %7 = arith.truncf %6 : vector<8x256xf32> to vector<8x256xbf16>
    %c0_5 = arith.constant 0 : index
    %c0_6 = arith.constant 0 : index
    %8 = vector.load %arg6[%c0_5, %c0_6] : memref<256x1152xbf16, #tpu.memory_space<vmem>>, vector<256x384xbf16>
    %cst = arith.constant dense<0.000000e+00> : vector<8x384xf32>
    %9 = tpu.matmul %7, %8, %cst {dimension_numbers = #tpu.dot_dimension_numbers<[1], [0], [0], [1], [0, 0, 1, 1], [], []>} : vector<8x256xbf16>, vector<256x384xbf16>, vector<8x384xf32> -> vector<8x384xf32>
    %c0_7 = arith.constant 0 : index
    %c0_8 = arith.constant 0 : index
    %10 = vector.load %arg8[%c0_7, %c0_8] : memref<1x1152xf32, #tpu.memory_space<vmem>>, vector<1x384xf32>
    %11 = vector.broadcast %10 : vector<1x384xf32> to vector<8x384xf32>
    %12 = arith.addf %9, %11 : vector<8x384xf32>
    %13 = vector.extract_strided_slice %12 {offsets = [0, 0], sizes = [8, 128], strides = [1, 1]} : vector<8x384xf32> to vector<8x128xf32>
    %14 = arith.negf %13 : vector<8x128xf32>
    %15 = math.exp %14 : vector<8x128xf32>
    %cst_9 = arith.constant 1.000000e+00 : f32
    %16 = vector.broadcast %cst_9 : f32 to vector<8x128xf32>
    %17 = arith.addf %16, %15 : vector<8x128xf32>
    %18 = arith.divf %16, %17 : vector<8x128xf32>
    %19 = vector.extract_strided_slice %12 {offsets = [0, 128], sizes = [8, 128], strides = [1, 1]} : vector<8x384xf32> to vector<8x128xf32>
    %20 = arith.negf %19 : vector<8x128xf32>
    %21 = math.exp %20 : vector<8x128xf32>
    %cst_10 = arith.constant 1.000000e+00 : f32
    %22 = vector.broadcast %cst_10 : f32 to vector<8x128xf32>
    %23 = arith.addf %22, %21 : vector<8x128xf32>
    %24 = arith.divf %22, %23 : vector<8x128xf32>
    %25 = arith.mulf %18, %5 : vector<8x128xf32>
    %26 = arith.truncf %25 : vector<8x128xf32> to vector<8x128xbf16>
    %27 = vector.extract_strided_slice %12 {offsets = [0, 256], sizes = [8, 128], strides = [1, 1]} : vector<8x384xf32> to vector<8x128xf32>
    %c0_11 = arith.constant 0 : index
    %c0_12 = arith.constant 0 : index
    %28 = vector.load %arg7[%c0_11, %c0_12] : memref<128x384xbf16, #tpu.memory_space<vmem>>, vector<128x128xbf16>
    %cst_13 = arith.constant dense<0.000000e+00> : vector<8x128xf32>
    %29 = tpu.matmul %26, %28, %cst_13 {dimension_numbers = #tpu.dot_dimension_numbers<[1], [0], [0], [1], [0, 0, 1, 1], [], []>} : vector<8x128xbf16>, vector<128x128xbf16>, vector<8x128xf32> -> vector<8x128xf32>
    %30 = arith.addf %27, %29 : vector<8x128xf32>
    %31 = math.tanh %30 : vector<8x128xf32>
    %cst_14 = arith.constant 1.000000e+00 : f32
    %32 = vector.broadcast %cst_14 : f32 to vector<8x128xf32>
    %33 = arith.subf %32, %24 : vector<8x128xf32>
    %34 = arith.mulf %33, %5 : vector<8x128xf32>
    %35 = arith.mulf %24, %31 : vector<8x128xf32>
    %36 = arith.addf %34, %35 : vector<8x128xf32>
    %c0_15 = arith.constant 0 : index
    %c0_16 = arith.constant 0 : index
    %37 = vector.load %arg13[%c0_15, %c0_16] : memref<8x128xf32, #tpu.memory_space<vmem>>, vector<8x128xf32>
    %38 = tpu.concatenate %36, %37 in 1 : vector<8x128xf32>, vector<8x128xf32> -> vector<8x256xf32>
    %39 = arith.truncf %38 : vector<8x256xf32> to vector<8x256xbf16>
    %c0_17 = arith.constant 0 : index
    %c384 = arith.constant 384 : index
    %40 = vector.load %arg6[%c0_17, %c384] : memref<256x1152xbf16, #tpu.memory_space<vmem>>, vector<256x384xbf16>
    %cst_18 = arith.constant dense<0.000000e+00> : vector<8x384xf32>
    %41 = tpu.matmul %39, %40, %cst_18 {dimension_numbers = #tpu.dot_dimension_numbers<[1], [0], [0], [1], [0, 0, 1, 1], [], []>} : vector<8x256xbf16>, vector<256x384xbf16>, vector<8x384xf32> -> vector<8x384xf32>
    %c0_19 = arith.constant 0 : index
    %c384_20 = arith.constant 384 : index
    %42 = vector.load %arg8[%c0_19, %c384_20] : memref<1x1152xf32, #tpu.memory_space<vmem>>, vector<1x384xf32>
    %43 = vector.broadcast %42 : vector<1x384xf32> to vector<8x384xf32>
    %44 = arith.addf %41, %43 : vector<8x384xf32>
    %45 = vector.extract_strided_slice %44 {offsets = [0, 0], sizes = [8, 128], strides = [1, 1]} : vector<8x384xf32> to vector<8x128xf32>
    %46 = arith.negf %45 : vector<8x128xf32>
    %47 = math.exp %46 : vector<8x128xf32>
    %cst_21 = arith.constant 1.000000e+00 : f32
    %48 = vector.broadcast %cst_21 : f32 to vector<8x128xf32>
    %49 = arith.addf %48, %47 : vector<8x128xf32>
    %50 = arith.divf %48, %49 : vector<8x128xf32>
    %51 = vector.extract_strided_slice %44 {offsets = [0, 128], sizes = [8, 128], strides = [1, 1]} : vector<8x384xf32> to vector<8x128xf32>
    %52 = arith.negf %51 : vector<8x128xf32>
    %53 = math.exp %52 : vector<8x128xf32>
    %cst_22 = arith.constant 1.000000e+00 : f32
    %54 = vector.broadcast %cst_22 : f32 to vector<8x128xf32>
    %55 = arith.addf %54, %53 : vector<8x128xf32>
    %56 = arith.divf %54, %55 : vector<8x128xf32>
    %57 = arith.mulf %50, %37 : vector<8x128xf32>
    %58 = arith.truncf %57 : vector<8x128xf32> to vector<8x128xbf16>
    %59 = vector.extract_strided_slice %44 {offsets = [0, 256], sizes = [8, 128], strides = [1, 1]} : vector<8x384xf32> to vector<8x128xf32>
    %c0_23 = arith.constant 0 : index
    %c128 = arith.constant 128 : index
    %60 = vector.load %arg7[%c0_23, %c128] : memref<128x384xbf16, #tpu.memory_space<vmem>>, vector<128x128xbf16>
    %cst_24 = arith.constant dense<0.000000e+00> : vector<8x128xf32>
    %61 = tpu.matmul %58, %60, %cst_24 {dimension_numbers = #tpu.dot_dimension_numbers<[1], [0], [0], [1], [0, 0, 1, 1], [], []>} : vector<8x128xbf16>, vector<128x128xbf16>, vector<8x128xf32> -> vector<8x128xf32>
    %62 = arith.addf %59, %61 : vector<8x128xf32>
    %63 = math.tanh %62 : vector<8x128xf32>
    %cst_25 = arith.constant 1.000000e+00 : f32
    %64 = vector.broadcast %cst_25 : f32 to vector<8x128xf32>
    %65 = arith.subf %64, %56 : vector<8x128xf32>
    %66 = arith.mulf %65, %37 : vector<8x128xf32>
    %67 = arith.mulf %56, %63 : vector<8x128xf32>
    %68 = arith.addf %66, %67 : vector<8x128xf32>
    %69 = arith.addf %68, %36 : vector<8x128xf32>
    %c0_26 = arith.constant 0 : index
    %c0_27 = arith.constant 0 : index
    %70 = vector.load %arg14[%c0_26, %c0_27] : memref<8x128xf32, #tpu.memory_space<vmem>>, vector<8x128xf32>
    %71 = tpu.concatenate %69, %70 in 1 : vector<8x128xf32>, vector<8x128xf32> -> vector<8x256xf32>
    %72 = arith.truncf %71 : vector<8x256xf32> to vector<8x256xbf16>
    %c0_28 = arith.constant 0 : index
    %c768 = arith.constant 768 : index
    %73 = vector.load %arg6[%c0_28, %c768] : memref<256x1152xbf16, #tpu.memory_space<vmem>>, vector<256x384xbf16>
    %cst_29 = arith.constant dense<0.000000e+00> : vector<8x384xf32>
    %74 = tpu.matmul %72, %73, %cst_29 {dimension_numbers = #tpu.dot_dimension_numbers<[1], [0], [0], [1], [0, 0, 1, 1], [], []>} : vector<8x256xbf16>, vector<256x384xbf16>, vector<8x384xf32> -> vector<8x384xf32>
    %c0_30 = arith.constant 0 : index
    %c768_31 = arith.constant 768 : index
    %75 = vector.load %arg8[%c0_30, %c768_31] : memref<1x1152xf32, #tpu.memory_space<vmem>>, vector<1x384xf32>
    %76 = vector.broadcast %75 : vector<1x384xf32> to vector<8x384xf32>
    %77 = arith.addf %74, %76 : vector<8x384xf32>
    %78 = vector.extract_strided_slice %77 {offsets = [0, 0], sizes = [8, 128], strides = [1, 1]} : vector<8x384xf32> to vector<8x128xf32>
    %79 = arith.negf %78 : vector<8x128xf32>
    %80 = math.exp %79 : vector<8x128xf32>
    %cst_32 = arith.constant 1.000000e+00 : f32
    %81 = vector.broadcast %cst_32 : f32 to vector<8x128xf32>
    %82 = arith.addf %81, %80 : vector<8x128xf32>
    %83 = arith.divf %81, %82 : vector<8x128xf32>
    %84 = vector.extract_strided_slice %77 {offsets = [0, 128], sizes = [8, 128], strides = [1, 1]} : vector<8x384xf32> to vector<8x128xf32>
    %85 = arith.negf %84 : vector<8x128xf32>
    %86 = math.exp %85 : vector<8x128xf32>
    %cst_33 = arith.constant 1.000000e+00 : f32
    %87 = vector.broadcast %cst_33 : f32 to vector<8x128xf32>
    %88 = arith.addf %87, %86 : vector<8x128xf32>
    %89 = arith.divf %87, %88 : vector<8x128xf32>
    %90 = arith.mulf %83, %70 : vector<8x128xf32>
    %91 = arith.truncf %90 : vector<8x128xf32> to vector<8x128xbf16>
    %92 = vector.extract_strided_slice %77 {offsets = [0, 256], sizes = [8, 128], strides = [1, 1]} : vector<8x384xf32> to vector<8x128xf32>
    %c0_34 = arith.constant 0 : index
    %c256 = arith.constant 256 : index
    %93 = vector.load %arg7[%c0_34, %c256] : memref<128x384xbf16, #tpu.memory_space<vmem>>, vector<128x128xbf16>
    %cst_35 = arith.constant dense<0.000000e+00> : vector<8x128xf32>
    %94 = tpu.matmul %91, %93, %cst_35 {dimension_numbers = #tpu.dot_dimension_numbers<[1], [0], [0], [1], [0, 0, 1, 1], [], []>} : vector<8x128xbf16>, vector<128x128xbf16>, vector<8x128xf32> -> vector<8x128xf32>
    %95 = arith.addf %92, %94 : vector<8x128xf32>
    %96 = math.tanh %95 : vector<8x128xf32>
    %cst_36 = arith.constant 1.000000e+00 : f32
    %97 = vector.broadcast %cst_36 : f32 to vector<8x128xf32>
    %98 = arith.subf %97, %89 : vector<8x128xf32>
    %99 = arith.mulf %98, %70 : vector<8x128xf32>
    %100 = arith.mulf %89, %96 : vector<8x128xf32>
    %101 = arith.addf %99, %100 : vector<8x128xf32>
    %102 = arith.truncf %101 : vector<8x128xf32> to vector<8x128xbf16>
    %c0_37 = arith.constant 0 : index
    %c0_38 = arith.constant 0 : index
    %103 = vector.load %arg9[%c0_37, %c0_38] : memref<128x128xbf16, #tpu.memory_space<vmem>>, vector<128x128xbf16>
    %cst_39 = arith.constant dense<0.000000e+00> : vector<8x128xf32>
    %104 = tpu.matmul %102, %103, %cst_39 {dimension_numbers = #tpu.dot_dimension_numbers<[1], [0], [0], [1], [0, 0, 1, 1], [], []>} : vector<8x128xbf16>, vector<128x128xbf16>, vector<8x128xf32> -> vector<8x128xf32>
    %c0_40 = arith.constant 0 : index
    %c0_41 = arith.constant 0 : index
    %105 = vector.load %arg10[%c0_40, %c0_41] : memref<1x128xf32, #tpu.memory_space<vmem>>, vector<1x128xf32>
    %106 = vector.broadcast %105 : vector<1x128xf32> to vector<8x128xf32>
    %107 = arith.addf %104, %106 : vector<8x128xf32>
    %108 = vector.extract_strided_slice %107 {offsets = [0, 0], sizes = [8, 8], strides = [1, 1]} : vector<8x128xf32> to vector<8x8xf32>
    %c0_42 = arith.constant 0 : index
    %c0_43 = arith.constant 0 : index
    %c0_44 = arith.constant 0 : index
    %109 = vector.load %arg11[%c0_42, %c0_43, %c0_44] : memref<1x8x8xf32, #tpu.memory_space<vmem>>, vector<1x8x8xf32>
    %110 = vector.shape_cast %109 : vector<1x8x8xf32> to vector<8x8xf32>
    %111 = vector.shape_cast %108 : vector<8x8xf32> to vector<1x8x8xf32>
    tpu.vector_store %arg11[%c0_42, %c0_43, %c0_44], %111 {strides = array<i32>} : memref<1x8x8xf32, #tpu.memory_space<vmem>>, vector<1x8x8xf32>,
    %c0_45 = arith.constant 0 : index
    %c0_46 = arith.constant 0 : index
    %112 = vector.load %arg12[%c0_45, %c0_46] : memref<8x128xf32, #tpu.memory_space<vmem>>, vector<8x128xf32>
    tpu.vector_store %arg12[%c0_45, %c0_46], %36 {strides = array<i32>} : memref<8x128xf32, #tpu.memory_space<vmem>>, vector<8x128xf32>,
    %c0_47 = arith.constant 0 : index
    %c0_48 = arith.constant 0 : index
    %113 = vector.load %arg13[%c0_47, %c0_48] : memref<8x128xf32, #tpu.memory_space<vmem>>, vector<8x128xf32>
    tpu.vector_store %arg13[%c0_47, %c0_48], %68 {strides = array<i32>} : memref<8x128xf32, #tpu.memory_space<vmem>>, vector<8x128xf32>,
    %c0_49 = arith.constant 0 : index
    %c0_50 = arith.constant 0 : index
    %114 = vector.load %arg14[%c0_49, %c0_50] : memref<8x128xf32, #tpu.memory_space<vmem>>, vector<8x128xf32>
    tpu.vector_store %arg14[%c0_49, %c0_50], %101 {strides = array<i32>} : memref<8x128xf32, #tpu.memory_space<vmem>>, vector<8x128xf32>,
    return
  }
  func.func @transform_0(%arg0: i32, %arg1: i32) -> (i32, i32, i32) {
    %c0_i32 = arith.constant 0 : i32
    %c0_i32_0 = arith.constant 0 : i32
    return %arg1, %arg0, %c0_i32 : i32, i32, i32
  }
  func.func @transform_1(%arg0: i32, %arg1: i32) -> (i32, i32) {
    %c0_i32 = arith.constant 0 : i32
    %c0_i32_0 = arith.constant 0 : i32
    return %arg0, %c0_i32 : i32, i32
  }
  func.func @transform_2(%arg0: i32, %arg1: i32) -> (i32, i32) {
    %c0_i32 = arith.constant 0 : i32
    %c0_i32_0 = arith.constant 0 : i32
    return %arg0, %c0_i32 : i32, i32
  }
  func.func @transform_3(%arg0: i32, %arg1: i32) -> (i32, i32) {
    %c0_i32 = arith.constant 0 : i32
    %c0_i32_0 = arith.constant 0 : i32
    return %arg0, %c0_i32 : i32, i32
  }
  func.func @transform_4(%arg0: i32, %arg1: i32) -> (i32, i32) {
    %c0_i32 = arith.constant 0 : i32
    %c0_i32_0 = arith.constant 0 : i32
    %c0_i32_1 = arith.constant 0 : i32
    return %c0_i32, %c0_i32_0 : i32, i32
  }
  func.func @transform_5(%arg0: i32, %arg1: i32) -> (i32, i32) {
    %c0_i32 = arith.constant 0 : i32
    %c0_i32_0 = arith.constant 0 : i32
    %c0_i32_1 = arith.constant 0 : i32
    return %c0_i32, %c0_i32_0 : i32, i32
  }
  func.func @transform_6(%arg0: i32, %arg1: i32) -> (i32, i32) {
    %c0_i32 = arith.constant 0 : i32
    %c0_i32_0 = arith.constant 0 : i32
    %c0_i32_1 = arith.constant 0 : i32
    return %c0_i32, %c0_i32_0 : i32, i32
  }
  func.func @transform_7(%arg0: i32, %arg1: i32) -> (i32, i32) {
    %c0_i32 = arith.constant 0 : i32
    %c0_i32_0 = arith.constant 0 : i32
    %c0_i32_1 = arith.constant 0 : i32
    return %c0_i32, %c0_i32_0 : i32, i32
  }
  func.func @transform_8(%arg0: i32, %arg1: i32) -> (i32, i32) {
    %c0_i32 = arith.constant 0 : i32
    %c0_i32_0 = arith.constant 0 : i32
    %c0_i32_1 = arith.constant 0 : i32
    return %c0_i32, %c0_i32_0 : i32, i32
  }
  func.func @transform_9(%arg0: i32, %arg1: i32) -> (i32, i32, i32) {
    %c0_i32 = arith.constant 0 : i32
    %c0_i32_0 = arith.constant 0 : i32
    return %arg1, %arg0, %c0_i32 : i32, i32, i32
  }
  func.func @transform_10(%arg0: i32, %arg1: i32) -> (i32, i32) {
    %c0_i32 = arith.constant 0 : i32
    %c0_i32_0 = arith.constant 0 : i32
    return %arg0, %c0_i32 : i32, i32
  }
  func.func @transform_11(%arg0: i32, %arg1: i32) -> (i32, i32) {
    %c0_i32 = arith.constant 0 : i32
    %c0_i32_0 = arith.constant 0 : i32
    return %arg0, %c0_i32 : i32, i32
  }
  func.func @transform_12(%arg0: i32, %arg1: i32) -> (i32, i32) {
    %c0_i32 = arith.constant 0 : i32
    %c0_i32_0 = arith.constant 0 : i32
    return %arg0, %c0_i32 : i32, i32
  }
}

</mosaic_0001>

<bundles_post_ra>
// kernel: high_frequency_forward_seq.1
= control target key start
LH: loop header
LB: loop body
LE: loop exit
PB: predicated region body
PF: predicated region fallthrough
CT: control target
= control target key end

     0   :  { %18 = vsyncpa [#allocation3], 0  ;;  %s3878_s0 = inlined_call_operand.vmem [shape: f32[8,8,128], index: 0, kind: input, shape index: {}]   ;;  %s3879_s1 = inlined_call_operand.vmem [shape: f32[8,128], index: 1, kind: input, shape index: {}]   ;;  %s3880_s2 = inlined_call_operand.vmem [shape: f32[8,128], index: 2, kind: input, shape index: {}]   ;;  %s3881_s3 = inlined_call_operand.vmem [shape: f32[8,128], index: 3, kind: input, shape index: {}]   ;;  %s3882_s4 = inlined_call_operand.hbm [shape: bf16[256,1152], index: 4, kind: input, shape index: {}]   ;;  %s3883_s5 = inlined_call_operand.hbm [shape: bf16[128,384], index: 5, kind: input, shape index: {}]   ;;  %s3884_s6 = inlined_call_operand.vmem [shape: f32[1,1152], index: 6, kind: input, shape index: {}]   ;;  %s3885_s7 = inlined_call_operand.vmem [shape: bf16[128,128], index: 7, kind: input, shape index: {}]   ;;  %s3886_s8 = inlined_call_operand.vmem [shape: f32[1,128], index: 8, kind: input, shape index: {}]   ;;  %s3887_s9 = inlined_call_operand.vmem [shape: f32[8,8,8], index: 9, kind: output, shape index: {0}]   ;;  %s3888_s10 = inlined_call_operand.vmem [shape: f32[8,128], index: 10, kind: output, shape index: {1}]   ;;  %s3889_s11 = inlined_call_operand.vmem [shape: f32[8,128], index: 11, kind: output, shape index: {2}]   ;;  %s3890_s12 = inlined_call_operand.vmem [shape: f32[8,128], index: 12, kind: output, shape index: {3}]  }
   0x1   :  { %19 = vsyncpa [#allocation5], 0  ;;  %s3626_s21 = smov 0   ;;  %s3628_s22 = smov 0  }
   0x2   :  { %s3630_s23 = smov 0  }
   0x3 LB: > { %s2477_s24 = sadd.s32 4294967295, %s3553_s23   ;;  %s34_s25 = sadd.s32 1, %s3549_s22  ;;  %s3553_s23 = sphi %s3630_s23, %s25_s23   ;;  %s3549_s22 = sphi %s3628_s22, %s3894_s22   ;;  %s3545_s21 = sphi %s3626_s21, %s3893_s21  }
   0x4   : > { %p35_p0 = scmp.ge.s32.totalorder %s34_s25, 8  ;;  %p2479_p1 = scmp.ge.s32.totalorder %s3553_s23, 1 }
   0x5   : > { %p359_p2 = scmp.lt.s32.totalorder %s3553_s23, 9  ;;  %p3651_p4 = scmp.eq.s32.totalorder %s2477_s24, 0 }
   0x6   : > { %s3896_s25 = smov (%p35_p0, %s34_s25), 0  ;;  %s391_s30 = sshll.u32 %s3882_s4, 4  ;;  %s392_s30 = int_to_ptr.hbm [resolvable:$true] %s391_s30 }
   0x7   : > { %p3647_p3 = pnand %p2479_p1, %p359_p2  ;;  %s3555_s13 = smov [#allocation2]  }
   0x8   : > { %s393_s14 = sshll.u32 %s3555_s13, 4  ;;  %s405_s17 = sshll.u32 %s3883_s5, 4  ;;  %s394_s14 = int_to_ptr.vmem [resolvable:$true] %s393_s14  ;;  %s406_s17 = int_to_ptr.hbm [resolvable:$true] %s405_s17 }
   0x9   : > { %p3391_p5 = pneg %p3647_p3  ;;  %s3556_s18 = smov 576  }
   0xa   : > { %s3557_s19 = smov 36   ;;  %s3558_s20 = smov [#allocation4]  }
   0xb   : > { %p3392_p6 = pnand %p3651_p4, %p3391_p5  ;;  %s407_s24 = sshll.u32 %s3558_s20, 4  ;;  %s408_s24 = int_to_ptr.vmem [resolvable:$true] %s407_s24 }
   0xc   : > { %s3559_s28 = smov 192   ;;  %s3560_s29 = smov 12  }
   0xd   : > { %3394 = dma.hbm_to_vmem [thread:$0]  (!%p3392_p6), %s392_s30, 18432, %s394_s14, [#allocation3], %s3556_s18, %s3556_s18, %s3557_s19  }
   0xe   : > { %3397 = dma.hbm_to_vmem [thread:$0]  (!%p3392_p6), %s406_s17, 3072, %s408_s24, [#allocation5], %s3559_s28, %s3559_s28, %s3560_s29  }
   0xf   : > { %442 = sbr.rel (%p3647_p3) target bundleno = 1132 (0x46c), region = 56 }
  0x14   : > { %3536 = dma.done.wait (%p3651_p4), [#allocation3], 18432  }
  0x15   : > { %3538 = vsyncadd (%p3651_p4), [#allocation3], 4294948864 }
  0x16   : > { %3540 = dma.done.wait (%p3651_p4), [#allocation5], 3072  }
  0x17   : > { %3542 = vsyncadd (%p3651_p4), [#allocation5], 4294964224  ;;  %p518_p7 = scmp.lt.s32.totalorder %s3545_s21, 7  ;;  %p2491_p8 = scmp.ne.s32.totalorder %s3545_s21, 0 }
  0x19   : > { %s519_s30 = scalar_select %p518_p7, %s3545_s21, 7 }
  0x1a   : > { %559 = sbr.rel (%p2491_p8) target bundleno = 35 (0x23), region = 68 }
  0x1b   : > { %s2489_s13 = sshll.u32 %s519_s30, 3 }
  0x1c   : > { %s3680_s15 = scalar_lea.vmem %s3878_s0, %s2489_s13  ;;  %s3685_s18 = scalar_lea.vmem %s3887_s9, %s2489_s13 }
  0x1f   : > { %v560_v0 = vld [vmem:[%s3879_s1] sm:$0xff] }
  0x20   : > { %v562_v1 = vld [vmem:[%s3880_s2] sm:$0xff]  ;;  %561 = vst [vmem:[%s3888_s10] sm:$0xff] %v560_v0 }
  0x21   : > { %v564_v2 = vld [vmem:[%s3881_s3] sm:$0xff]  ;;  %563 = vst [vmem:[%s3889_s11] sm:$0xff] %v562_v1 }
  0x22   : > { %565 = vst [vmem:[%s3890_s12] sm:$0xff] %v564_v2 }
  0x23 PF: > { %v2578_v3 = vld [vmem:[#allocation2 + $0x1f8] sm:$0xf]  ;;  %v3229_v4 = vld [vmem:[#allocation2 + $0x218] sm:$0xf0]  ;;  %v2566_v8 = vld [vmem:[#allocation2 + $0x1b0] sm:$0xf] }
  0x24   : > { %v2674_v5 = vld [vmem:[#allocation2 + $0x438] sm:$0xf]  ;;  %v2579_v6 = vor.u32 %v3229_v4, %v2578_v3  ;;  %v3253_v7 = vld [vmem:[#allocation2 + $0x458] sm:$0xf0]  ;;  %v3226_v9 = vld [vmem:[#allocation2 + $0x1d0] sm:$0xf0] }
  0x25   : > { %v2675_v10 = vor.u32 %v3253_v7, %v2674_v5  ;;  %v2662_v11 = vld [vmem:[#allocation2 + $0x3f0] sm:$0xf]  ;;  %v3250_v12 = vld [vmem:[#allocation2 + $0x410] sm:$0xf0]  ;;  %v2567_v13 = vor.u32 %v3226_v9, %v2566_v8  ;;  %v2554_v15 = vld [vmem:[#allocation2 + $0x168] sm:$0xf] }
  0x26   : > { %898 = vmatpush.bf16.msra.mxu0 %v2579_v6  ;;  %v2663_v14 = vor.u32 %v3250_v12, %v2662_v11  ;;  %v3223_v16 = vld [vmem:[#allocation2 + $0x188] sm:$0xf0]  ;;  %v2650_v17 = vld [vmem:[#allocation2 + $0x3a8] sm:$0xf]  ;;  %v2542_v21 = vld [vmem:[#allocation2 + $0x120] sm:$0xf] }
  0x27   : > { %911 = vmatpush.bf16.msra.mxu1 %v2675_v10  ;;  %v3247_v18 = vld [vmem:[#allocation2 + $0x3c8] sm:$0xf0]  ;;  %v2555_v19 = vor.u32 %v3223_v16, %v2554_v15  ;;  %v3220_v22 = vld [vmem:[#allocation2 + $0x140] sm:$0xf0]  ;;  %v2638_v23 = vld [vmem:[#allocation2 + $0x360] sm:$0xf] }
  0x28   : > { %v2651_v20 = vor.u32 %v3247_v18, %v2650_v17  ;;  %v3244_v24 = vld [vmem:[#allocation2 + $0x380] sm:$0xf0]  ;;  %v2530_v25 = vld [vmem:[#allocation2 + $0xd8] sm:$0xf]  ;;  %v3217_v26 = vld [vmem:[#allocation2 + $0xf8] sm:$0xf0]  ;;  %v2543_v27 = vor.u32 %v3220_v22, %v2542_v21 }
  0x29   : > { %v2626_v28 = vld [vmem:[#allocation2 + $0x318] sm:$0xf]  ;;  %v3241_v29 = vld [vmem:[#allocation2 + $0x338] sm:$0xf0]  ;;  %v2580_v31 = vld [vmem:[#allocation2 + $0x21c] sm:$0xf0]  ;;  %v2639_v32 = vor.u32 %v3244_v24, %v2638_v23  ;;  %v2531_v42 = vor.u32 %v3217_v26, %v2530_v25 }
  0x2a   : > { %899 = vmatpush.bf16.msra.mxu0 %v2567_v13  ;;  %v3228_v30 = vld [vmem:[#allocation2 + $0x1fc] sm:$0xf]  ;;  %v2676_v35 = vld [vmem:[#allocation2 + $0x45c] sm:$0xf0]  ;;  %v3225_v36 = vld [vmem:[#allocation2 + $0x1b4] sm:$0xf]  ;;  %v2627_v47 = vor.u32 %v3241_v29, %v2626_v28 }
  0x2b   : > { %912 = vmatpush.bf16.msra.mxu1 %v2663_v14  ;;  %v2583_v33 = vor.u32 %v3228_v30, %v2580_v31  ;;  %v3252_v34 = vld [vmem:[#allocation2 + $0x43c] sm:$0xf]  ;;  %v2568_v38 = vld [vmem:[#allocation2 + $0x1d4] sm:$0xf0]  ;;  %v3249_v39 = vld [vmem:[#allocation2 + $0x3f4] sm:$0xf] }
  0x2c   : > { %v2679_v37 = vor.u32 %v3252_v34, %v2676_v35  ;;  %v2664_v40 = vld [vmem:[#allocation2 + $0x414] sm:$0xf0]  ;;  %v2571_v41 = vor.u32 %v3225_v36, %v2568_v38  ;;  %v2518_v43 = vld [vmem:[#allocation2 + $0x90] sm:$0xf]  ;;  %v3222_v45 = vld [vmem:[#allocation2 + $0x16c] sm:$0xf] }
  0x2d   : > { %924 = vmatpush.bf16.msra.mxu2 %v2583_v33  ;;  %v2667_v44 = vor.u32 %v3249_v39, %v2664_v40  ;;  %v2556_v46 = vld [vmem:[#allocation2 + $0x18c] sm:$0xf0]  ;;  %v3214_v48 = vld [vmem:[#allocation2 + $0xb0] sm:$0xf0]  ;;  %v3246_v49 = vld [vmem:[#allocation2 + $0x3ac] sm:$0xf] }
  0x2e   : > { %900 = vmatpush.bf16.msra.mxu0 %v2555_v19  ;;  %937 = vmatpush.bf16.msra.mxu3 %v2679_v37  ;;  %v2652_v50 = vld [vmem:[#allocation2 + $0x3cc] sm:$0xf0]  ;;  %v3238_v52 = vld [vmem:[#allocation2 + $0x2f0] sm:$0xf0]  ;;  %v2559_v53 = vor.u32 %v3222_v45, %v2556_v46  ;;  %v2519_v54 = vor.u32 %v3214_v48, %v2518_v43  ;;  %v2506_v55 = vld [vmem:[#allocation2 + $0x48] sm:$0xf] }
  0x2f   : > { %913 = vmatpush.bf16.msra.mxu1 %v2651_v20  ;;  %v2614_v51 = vld [vmem:[#allocation2 + $0x2d0] sm:$0xf]  ;;  %v2655_v56 = vor.u32 %v3246_v49, %v2652_v50  ;;  %v3219_v57 = vld [vmem:[#allocation2 + $0x124] sm:$0xf]  ;;  %v2544_v58 = vld [vmem:[#allocation2 + $0x144] sm:$0xf0] }
  0x30   : > { %v2615_v59 = vor.u32 %v3238_v52, %v2614_v51  ;;  %v3211_v60 = vld [vmem:[#allocation2 + $0x68] sm:$0xf0]  ;;  %v3243_v61 = vld [vmem:[#allocation2 + $0x364] sm:$0xf]  ;;  %v2640_v62 = vld [vmem:[#allocation2 + $0x384] sm:$0xf0]  ;;  %v2547_v1 = vor.u32 %v3219_v57, %v2544_v58 }
  0x31   : > { %925 = vmatpush.bf16.msra.mxu2 %v2571_v41  ;;  %v2602_v63 = vld [vmem:[#allocation2 + $0x288] sm:$0xf]  ;;  %v3235_v0 = vld [vmem:[#allocation2 + $0x2a8] sm:$0xf0]  ;;  %v2507_v2 = vor.u32 %v3211_v60, %v2506_v55  ;;  %v2494_v3 = vld [vmem:[#allocation2] sm:$0xf]  ;;  %v2643_v4 = vor.u32 %v3243_v61, %v2640_v62 }
  0x32   : > { %901 = vmatpush.bf16.msra.mxu0 %v2543_v27  ;;  %938 = vmatpush.bf16.msra.mxu3 %v2667_v44  ;;  %v3216_v5 = vld [vmem:[#allocation2 + $0xdc] sm:$0xf]  ;;  %v2532_v6 = vld [vmem:[#allocation2 + $0xfc] sm:$0xf0]  ;;  %v2603_v7 = vor.u32 %v3235_v0, %v2602_v63  ;;  %v3208_v8 = vld [vmem:[#allocation2 + $0x20] sm:$0xf0] }
  0x33   : > { %914 = vmatpush.bf16.msra.mxu1 %v2639_v32  ;;  %v3240_v9 = vld [vmem:[#allocation2 + $0x31c] sm:$0xf]  ;;  %v2628_v10 = vld [vmem:[#allocation2 + $0x33c] sm:$0xf0]  ;;  %v3232_v12 = vld [vmem:[#allocation2 + $0x260] sm:$0xf0]  ;;  %v2535_v13 = vor.u32 %v3216_v5, %v2532_v6  ;;  %v2495_v14 = vor.u32 %v3208_v8, %v2494_v3 }
  0x34   : > { %v2590_v11 = vld [vmem:[#allocation2 + $0x240] sm:$0xf]  ;;  %v2631_v16 = vor.u32 %v3240_v9, %v2628_v10  ;;  %v3213_v17 = vld [vmem:[#allocation2 + $0x94] sm:$0xf]  ;;  %v2520_v18 = vld [vmem:[#allocation2 + $0xb4] sm:$0xf0] }
  0x35   : > { %926 = vmatpush.bf16.msra.mxu2 %v2559_v53  ;;  %v566_v15 = vld [vmem:[%s3680_s15] sm:$0xff]  ;;  %v2591_v19 = vor.u32 %v3232_v12, %v2590_v11  ;;  %v3237_v21 = vld [vmem:[#allocation2 + $0x2d4] sm:$0xf]  ;;  %v2616_v22 = vld [vmem:[#allocation2 + $0x2f4] sm:$0xf0]  ;;  %v2523_v24 = vor.u32 %v3213_v17, %v2520_v18 }
  0x36   : > { %902 = vmatpush.bf16.msra.mxu0 %v2531_v42  ;;  %939 = vmatpush.bf16.msra.mxu3 %v2655_v56  ;;  %v3710_v20 = vld [vmem:[%s3888_s10] sm:$0xff]  ;;  %v3712_v23 = vpack.c.bf16 %v566_v15, %v566_v15  ;;  %v2619_v26 = vor.u32 %v3237_v21, %v2616_v22  ;;  %v3210_v27 = vld [vmem:[#allocation2 + $0x4c] sm:$0xf]  ;;  %v2508_v28 = vld [vmem:[#allocation2 + $0x6c] sm:$0xf0] }
  0x37   : > { %915 = vmatpush.bf16.msra.mxu1 %v2627_v47  ;;  %v3716_v25 = vpack.c.bf16 %v3710_v20, %v3710_v20  ;;  %v3234_v29 = vld [vmem:[#allocation2 + $0x28c] sm:$0xf]  ;;  %v2604_v30 = vld [vmem:[#allocation2 + $0x2ac] sm:$0xf0]  ;;  %v2511_v31 = vor.u32 %v3210_v27, %v2508_v28  ;;  %v3207_v33 = vld [vmem:[#allocation2 + $0x4] sm:$0xf] }
  0x38   : > { %v2607_v32 = vor.u32 %v3234_v29, %v2604_v30  ;;  %v2496_v34 = vld [vmem:[#allocation2 + $0x24] sm:$0xf0]  ;;  %v3231_v35 = vld [vmem:[#allocation2 + $0x244] sm:$0xf]  ;;  %v2586_v39 = vld [vmem:[#allocation2 + $0x200] sm:$0xf] }
  0x39   : > { %927 = vmatpush.bf16.msra.mxu2 %v2547_v1  ;;  %v2592_v36 = vld [vmem:[#allocation2 + $0x264] sm:$0xf0]  ;;  %v2499_v37 = vor.u32 %v3207_v33, %v2496_v34  ;;  %v3230_v40 = vld [vmem:[#allocation2 + $0x220] sm:$0xf0]  ;;  %v2682_v42 = vld [vmem:[#allocation2 + $0x440] sm:$0xf] }
  0x3a   : > { %903 = vmatpush.bf16.msra.mxu0 %v2519_v54  ;;  %940 = vmatpush.bf16.msra.mxu3 %v2643_v4  ;;  %v2595_v38 = vor.u32 %v3231_v35, %v2592_v36  ;;  %v2587_v41 = vor.u32 %v3230_v40, %v2586_v39  ;;  %v3254_v43 = vld [vmem:[#allocation2 + $0x460] sm:$0xf0]  ;;  %v2574_v45 = vld [vmem:[#allocation2 + $0x1b8] sm:$0xf]  ;;  %v3227_v46 = vld [vmem:[#allocation2 + $0x1d8] sm:$0xf0] }
  0x3b   : > { %916 = vmatpush.bf16.msra.mxu1 %v2615_v59  ;;  %v2683_v44 = vor.u32 %v3254_v43, %v2682_v42  ;;  %v2575_v47 = vor.u32 %v3227_v46, %v2574_v45  ;;  %v2670_v48 = vld [vmem:[#allocation2 + $0x3f8] sm:$0xf]  ;;  %v3251_v49 = vld [vmem:[#allocation2 + $0x418] sm:$0xf0]  ;;  %v2716_v50 = vld [vmem:[#allocation4 + $0xa8] sm:$0xf] }
  0x3c   : > { %v2671_v51 = vor.u32 %v3251_v49, %v2670_v48  ;;  %v3262_v52 = vld [vmem:[#allocation4 + $0xb0] sm:$0xf0]  ;;  %v2562_v54 = vld [vmem:[#allocation2 + $0x170] sm:$0xf]  ;;  %v3261_v61 = vld [vmem:[#allocation4 + $0x98] sm:$0xf0] }
  0x3d   : > { %928 = vmatpush.bf16.msra.mxu2 %v2535_v13  ;;  %v2717_v53 = vor.u32 %v3262_v52, %v2716_v50  ;;  %v3224_v55 = vld [vmem:[#allocation2 + $0x190] sm:$0xf0]  ;;  %v2658_v57 = vld [vmem:[#allocation2 + $0x3b0] sm:$0xf]  ;;  %v2550_v63 = vld [vmem:[#allocation2 + $0x128] sm:$0xf] }
  0x3e   : > { %904 = vmatpush.bf16.msra.mxu0 %v2507_v2  ;;  %941 = vmatpush.bf16.msra.mxu3 %v2631_v16  ;;  %v2563_v56 = vor.u32 %v3224_v55, %v2562_v54  ;;  %v3248_v58 = vld [vmem:[#allocation2 + $0x3d0] sm:$0xf0]  ;;  %v2712_v59 = vld [vmem:[#allocation4 + $0x90] sm:$0xf]  ;;  %v3221_v0 = vld [vmem:[#allocation2 + $0x148] sm:$0xf0] }
  0x3f   : > { %917 = vmatpush.bf16.msra.mxu1 %v2603_v7  ;;  %v2659_v60 = vor.u32 %v3248_v58, %v2658_v57  ;;  %v2713_v62 = vor.u32 %v3261_v61, %v2712_v59  ;;  %v2551_v1 = vor.u32 %v3221_v0, %v2550_v63  ;;  %v2646_v2 = vld [vmem:[#allocation2 + $0x368] sm:$0xf]  ;;  %v3245_v3 = vld [vmem:[#allocation2 + $0x388] sm:$0xf0]  ;;  %v2708_v4 = vld [vmem:[#allocation4 + $0x78] sm:$0xf] }
  0x40   : > { %v2647_v5 = vor.u32 %v3245_v3, %v2646_v2  ;;  %v3260_v6 = vld [vmem:[#allocation4 + $0x80] sm:$0xf0]  ;;  %v2538_v8 = vld [vmem:[#allocation2 + $0xe0] sm:$0xf]  ;;  %v3259_v15 = vld [vmem:[#allocation4 + $0x68] sm:$0xf0] }
  0x41   : > { %929 = vmatpush.bf16.msra.mxu2 %v2523_v24  ;;  %v2709_v7 = vor.u32 %v3260_v6, %v2708_v4  ;;  %v3218_v9 = vld [vmem:[#allocation2 + $0x100] sm:$0xf0]  ;;  %v2634_v11 = vld [vmem:[#allocation2 + $0x320] sm:$0xf]  ;;  %v2526_v17 = vld [vmem:[#allocation2 + $0x98] sm:$0xf] }
  0x42   : > { %905 = vmatpush.bf16.msra.mxu0 %v2495_v14  ;;  %942 = vmatpush.bf16.msra.mxu3 %v2619_v26  ;;  %v2539_v10 = vor.u32 %v3218_v9, %v2538_v8  ;;  %v3242_v12 = vld [vmem:[#allocation2 + $0x340] sm:$0xf0]  ;;  %v2704_v13 = vld [vmem:[#allocation4 + $0x60] sm:$0xf]  ;;  %v3215_v18 = vld [vmem:[#allocation2 + $0xb8] sm:$0xf0] }
  0x43   : > { %918 = vmatpush.bf16.msra.mxu1 %v2591_v19  ;;  %v2635_v14 = vor.u32 %v3242_v12, %v2634_v11  ;;  %v2705_v16 = vor.u32 %v3259_v15, %v2704_v13  ;;  %v2527_v19 = vor.u32 %v3215_v18, %v2526_v17  ;;  %v2622_v21 = vld [vmem:[#allocation2 + $0x2d8] sm:$0xf]  ;;  %v3239_v22 = vld [vmem:[#allocation2 + $0x2f8] sm:$0xf0]  ;;  %v2700_v24 = vld [vmem:[#allocation4 + $0x48] sm:$0xf] }
  0x44   : > { %v2623_v26 = vor.u32 %v3239_v22, %v2622_v21  ;;  %v3258_v27 = vld [vmem:[#allocation4 + $0x50] sm:$0xf0]  ;;  %v2514_v29 = vld [vmem:[#allocation2 + $0x50] sm:$0xf]  ;;  %v3257_v36 = vld [vmem:[#allocation4 + $0x38] sm:$0xf0] }
  0x45   : > { %906 = vmatmul.bf16.vlgmr.msra.gmra.mxu0 %v3712_v23  ;;  %930 = vmatpush.bf16.msra.mxu2 %v2511_v31  ;;  %v2701_v28 = vor.u32 %v3258_v27, %v2700_v24  ;;  %v3212_v30 = vld [vmem:[#allocation2 + $0x70] sm:$0xf0]  ;;  %v2696_v34 = vld [vmem:[#allocation4 + $0x30] sm:$0xf]  ;;  %v3233_v42 = vld [vmem:[#allocation2 + $0x268] sm:$0xf0] }
  0x46   : > { %919 = vmatmul.bf16.vlgmr.msra.gmra.mxu1 %v3716_v25  ;;  %943 = vmatpush.bf16.msra.mxu3 %v2607_v32  ;;  %v2515_v31 = vor.u32 %v3212_v30, %v2514_v29  ;;  %v2610_v32 = vld [vmem:[#allocation2 + $0x290] sm:$0xf]  ;;  %v3236_v33 = vld [vmem:[#allocation2 + $0x2b0] sm:$0xf0]  ;;  %v2697_v39 = vor.u32 %v3257_v36, %v2696_v34  ;;  %v2692_v43 = vld [vmem:[#allocation4 + $0x18] sm:$0xf] }
  0x47   : > { %950 = vmatpush.bf16.msrb.mxu0 %v2587_v41  ;;  %963 = vmatpush.bf16.msrb.mxu1 %v2683_v44  ;;  %v2611_v35 = vor.u32 %v3236_v33, %v2610_v32  ;;  %v2598_v41 = vld [vmem:[#allocation2 + $0x248] sm:$0xf]  ;;  %v3725_v44 = vld [vmem:[%s3884_s6] sm:$0x7]  ;;  %v3256_v45 = vld [vmem:[#allocation4 + $0x20] sm:$0xf0] }
  0x48   : > { %v2599_v46 = vor.u32 %v3233_v42, %v2598_v41  ;;  %v636_v48 = vperm.slane %v3725_v44, 0  ;;  %v2688_v49 = vld [vmem:[#allocation4] sm:$0xf]  ;;  %v3255_v50 = vld [vmem:[#allocation4 + $0x8] sm:$0xf0]  ;;  %v637_v8 = vperm.slane %v3725_v44, 1 }
  0x49   : > { %931 = vmatpush.bf16.msra.mxu2 %v2499_v37  ;;  %v2502_v37 = vld [vmem:[#allocation2 + $0x8] sm:$0xf]  ;;  %v2689_v52 = vor.u32 %v3255_v50, %v2688_v49  ;;  %v2804_v59 = vld [vmem:[#allocation2 + $0x204] sm:$0xf]  ;;  %v2792_v61 = vld [vmem:[#allocation2 + $0x1bc] sm:$0xf] }
  0x4a   : > { %944 = vmatpush.bf16.msra.mxu3 %v2595_v38  ;;  %v3209_v38 = vld [vmem:[#allocation2 + $0x28] sm:$0xf0]  ;;  %v3282_v63 = vld [vmem:[#allocation2 + $0x1dc] sm:$0xf0]  ;;  %v2900_v0 = vld [vmem:[#allocation2 + $0x444] sm:$0xf] }
  0x4b   : > { %951 = vmatpush.bf16.msrb.mxu0 %v2575_v47  ;;  %964 = vmatpush.bf16.msrb.mxu1 %v2671_v51  ;;  %v2503_v40 = vor.u32 %v3209_v38, %v2502_v37  ;;  %v2693_v47 = vor.u32 %v3256_v45, %v2692_v43  ;;  %v3308_v2 = vld [vmem:[#allocation2 + $0x448] sm:$0xf]  ;;  %v2793_v3 = vor.u32 %v3282_v63, %v2792_v61  ;;  %v2780_v4 = vld [vmem:[#allocation2 + $0x174] sm:$0xf]  ;;  %v2902_v6 = vld [vmem:[#allocation2 + $0x468] sm:$0xf0] }
  0x4c   : > { %932 = vmatmul.bf16.vlgmr.msra.gmra.mxu2 %v3712_v23  ;;  %v2905_v9 = vor.u32 %v3308_v2, %v2902_v6  ;;  %v3306_v11 = vld [vmem:[#allocation2 + $0x41c] sm:$0xf0]  ;;  %v3284_v13 = vld [vmem:[#allocation2 + $0x208] sm:$0xf]  ;;  %v3276_v27 = vld [vmem:[#allocation2 + $0x14c] sm:$0xf0] }
  0x4d   : > { %945 = vmatmul.bf16.vlgmr.msra.gmra.mxu3 %v3716_v25  ;;  %1080 = vmatpush.bf16.msrb.mxu2 %v2717_v53  ;;  %v3305_v15 = vld [vmem:[#allocation2 + $0x400] sm:$0xf]  ;;  %v2756_v45 = vld [vmem:[#allocation2 + $0xe4] sm:$0xf]  ;;  %v3303_v49 = vld [vmem:[#allocation2 + $0x3d4] sm:$0xf0] }
  0x4e   : > { %v3281_v50 = vld [vmem:[#allocation2 + $0x1c0] sm:$0xf]  ;;  %v3278_v63 = vld [vmem:[#allocation2 + $0x178] sm:$0xf] }
  0x4f   : > { %952 = vmatpush.bf16.msrb.mxu0 %v2563_v56  ;;  %965 = vmatpush.bf16.msrb.mxu1 %v2659_v60  ;;  %v3285_v60 = vld [vmem:[#allocation2 + $0x224] sm:$0xf0] }
  0x51   : > { %1081 = vmatpush.bf16.msrb.mxu2 %v2713_v62  ;;  %v2805_v62 = vor.u32 %v3285_v60, %v2804_v59  ;;  %v2864_v59 = vld [vmem:[#allocation2 + $0x36c] sm:$0xf]  ;;  %v3300_v60 = vld [vmem:[#allocation2 + $0x38c] sm:$0xf0] }
  0x53   : > { %953 = vmatpush.bf16.msrb.mxu0 %v2551_v1  ;;  %966 = vmatpush.bf16.msrb.mxu1 %v2647_v5  ;;  %v3309_v1 = vld [vmem:[#allocation2 + $0x464] sm:$0xf0]  ;;  %v3279_v5 = vld [vmem:[#allocation2 + $0x194] sm:$0xf0] }
  0x54   : > { %1430 = vmatpush.bf16.msrb.mxu3 %v2805_v62  ;;  %v2781_v18 = vor.u32 %v3279_v5, %v2780_v4  ;;  %v2865_v62 = vor.u32 %v3300_v60, %v2864_v59  ;;  %v2732_v4 = vld [vmem:[#allocation2 + $0x54] sm:$0xf]  ;;  %v3267_v5 = vld [vmem:[#allocation2 + $0x74] sm:$0xf0] }
  0x55   : > { %1082 = vmatpush.bf16.msrb.mxu2 %v2709_v7  ;;  %v2733_v6 = vor.u32 %v3267_v5, %v2732_v4  ;;  %v2818_v60 = vld [vmem:[#allocation2 + $0x270] sm:$0xf0]  ;;  %v3263_v4 = vld [vmem:[#allocation2 + $0x10] sm:$0xf] }
  0x56   : > { %v2722_v5 = vld [vmem:[#allocation2 + $0x30] sm:$0xf0] }
  0x57   : > { %954 = vmatpush.bf16.msrb.mxu0 %v2539_v10  ;;  %967 = vmatpush.bf16.msrb.mxu1 %v2635_v14  ;;  %v2888_v10 = vld [vmem:[#allocation2 + $0x3fc] sm:$0xf]  ;;  %v2806_v14 = vld [vmem:[#allocation2 + $0x228] sm:$0xf0] }
  0x58   : > { %v2889_v12 = vor.u32 %v3306_v11, %v2888_v10  ;;  %1431 = vmatpush.bf16.msrb.mxu3 %v2793_v3 }
  0x59   : > { %1083 = vmatpush.bf16.msrb.mxu2 %v2705_v16  ;;  %v2890_v16 = vld [vmem:[#allocation2 + $0x420] sm:$0xf0] }
  0x5a   : > { %v2893_v21 = vor.u32 %v3305_v15, %v2890_v16 }
  0x5b   : > { %955 = vmatpush.bf16.msrb.mxu0 %v2527_v19  ;;  %968 = vmatpush.bf16.msrb.mxu1 %v2623_v26  ;;  %v2809_v19 = vor.u32 %v3284_v13, %v2806_v14  ;;  %v2768_v26 = vld [vmem:[#allocation2 + $0x12c] sm:$0xf] }
  0x5c   : > { %1432 = vmatpush.bf16.msrb.mxu3 %v2781_v18  ;;  %v2769_v29 = vor.u32 %v3276_v27, %v2768_v26  ;;  %v2854_v13 = vld [vmem:[#allocation2 + $0x348] sm:$0xf0] }
  0x5d   : > { %1084 = vmatpush.bf16.msrb.mxu2 %v2701_v28 }
  0x5f   : > { %956 = vmatpush.bf16.msrb.mxu0 %v2515_v31  ;;  %969 = vmatpush.bf16.msrb.mxu1 %v2611_v35 }
  0x60   : > { %1433 = vmatpush.bf16.msrb.mxu3 %v2769_v29  ;;  %v3294_v29 = vld [vmem:[#allocation2 + $0x2fc] sm:$0xf0] }
  0x61   : > { %1085 = vmatpush.bf16.msrb.mxu2 %v2697_v39 }
  0x63   : > { %957 = vmatpush.bf16.msrb.mxu0 %v2503_v40  ;;  %970 = vmatpush.bf16.msrb.mxu1 %v2599_v46  ;;  %v3273_v46 = vld [vmem:[#allocation2 + $0x104] sm:$0xf0] }
  0x65   : > { %1086 = vmatpush.bf16.msrb.mxu2 %v2693_v47  ;;  %v2876_v47 = vld [vmem:[#allocation2 + $0x3b4] sm:$0xf] }
  0x66   : > { %958 = vmatmul.bf16.vlgmr.msrb.gmra.mxu0 %v3712_v23  ;;  %971 = vmatmul.bf16.vlgmr.msrb.gmra.mxu1 %v3716_v25  ;;  %v2901_v25 = vor.u32 %v3309_v1, %v2900_v0  ;;  %v2782_v0 = vld [vmem:[#allocation2 + $0x198] sm:$0xf0]  ;;  %v3299_v1 = vld [vmem:[#allocation2 + $0x370] sm:$0xf] }
  0x67   : > { %1456 = vmatpush.bf16.msra.mxu1 %v2809_v19  ;;  %v2785_v2 = vor.u32 %v3278_v63, %v2782_v0  ;;  %v2720_v19 = vld [vmem:[#allocation2 + $0xc] sm:$0xf] }
  0x68   : > { %1443 = vmatpush.bf16.msra.mxu0 %v2901_v25  ;;  %v2852_v25 = vld [vmem:[#allocation2 + $0x324] sm:$0xf] }
  0x69   : > { %1087 = vmatpush.bf16.msrb.mxu2 %v2689_v52  ;;  %v2877_v52 = vor.u32 %v3303_v49, %v2876_v47  ;;  %v2800_v49 = vld [vmem:[#allocation2 + $0x1c4] sm:$0xf] }
  0x6c   : > { %1444 = vmatpush.bf16.msra.mxu0 %v2889_v12  ;;  %v3296_v12 = vld [vmem:[#allocation2 + $0x328] sm:$0xf] }
  0x6d   : > { %1469 = vmatpush.bf16.msra.mxu2 %v2905_v9  ;;  %v2770_v9 = vld [vmem:[#allocation2 + $0x150] sm:$0xf0]  ;;  %v2857_v14 = vor.u32 %v3296_v12, %v2854_v13 }
  0x70   : > { %1445 = vmatpush.bf16.msra.mxu0 %v2877_v52 }
  0x71   : > { %1470 = vmatpush.bf16.msra.mxu2 %v2893_v21  ;;  %v3264_v21 = vld [vmem:[#allocation2 + $0x2c] sm:$0xf0] }
  0x72   : > { %v2721_v27 = vor.u32 %v3264_v21, %v2720_v19 }
  0x74   : > { %1446 = vmatpush.bf16.msra.mxu0 %v2865_v62  ;;  %v3280_v62 = vld [vmem:[#allocation2 + $0x19c] sm:$0xf0] }
  0xc2   : > { %v907_v51 = vpop.f32.mrf.mxu0 }
  0xc3   : > { %v908_v53 = vadd.f32 %v907_v51, %v636_v48  ;;  %v920_v54 = vpop.f32.mrf.mxu1  ;;  %v2757_v48 = vor.u32 %v3273_v46, %v2756_v45  ;;  %v2794_v51 = vld [vmem:[#allocation2 + $0x1e0] sm:$0xf0]  ;;  %v3290_v46 = vld [vmem:[#allocation2 + $0x298] sm:$0xf] }
  0xc4   : > { %v2746_v45 = vld [vmem:[#allocation2 + $0xc0] sm:$0xf0] }
  0xc5   : > { %v921_v55 = vadd.f32 %v920_v54, %v908_v53  ;;  %v2797_v53 = vor.u32 %v3281_v50, %v2794_v51  ;;  %v3302_v54 = vld [vmem:[#allocation2 + $0x3b8] sm:$0xf]  ;;  %1434 = vmatpush.bf16.msrb.mxu3 %v2757_v48  ;;  %v2830_v48 = vld [vmem:[#allocation2 + $0x2b8] sm:$0xf0]  ;;  %v3283_v50 = vld [vmem:[#allocation2 + $0x1e4] sm:$0xf0] }
  0xc6   : > { %v2833_v51 = vor.u32 %v3290_v46, %v2830_v48  ;;  %v2801_v52 = vor.u32 %v3283_v50, %v2800_v49  ;;  %v2848_v46 = vld [vmem:[#allocation2 + $0x2e4] sm:$0xf] }
  0xc7   : > { %v2684_v56 = vmul.f32 -1.442695, %v921_v55  ;;  %v2878_v55 = vld [vmem:[#allocation2 + $0x3d8] sm:$0xf0]  ;;  %1457 = vmatpush.bf16.msra.mxu1 %v2797_v53  ;;  %v2816_v53 = vld [vmem:[#allocation2 + $0x24c] sm:$0xf] }
  0xc9   : > { %3433 = vpow2.f32 %v2684_v56  ;;  %v2744_v56 = vld [vmem:[#allocation2 + $0x9c] sm:$0xf] }
  0xca   : > { %v909_v57 = vpop.f32.mrf.mxu0 }
  0xcb   : > { %v922_v58 = vpop.f32.mrf.mxu1  ;;  %v2881_v57 = vor.u32 %v3302_v54, %v2878_v55  ;;  %1458 = vmatpush.bf16.msra.mxu1 %v2785_v2  ;;  %v3288_v54 = vld [vmem:[#allocation2 + $0x26c] sm:$0xf0] }
  0xcc   : > { %v3270_v58 = vld [vmem:[#allocation2 + $0xbc] sm:$0xf0]  ;;  %v2817_v55 = vor.u32 %v3288_v54, %v2816_v53  ;;  %v3310_v2 = vld [vmem:[#allocation2 + $0x46c] sm:$0xf0]  ;;  %v2836_v53 = vld [vmem:[#allocation2 + $0x29c] sm:$0xf] }
  0xcd   : > { %v2745_v61 = vor.u32 %v3270_v58, %v2744_v56  ;;  %1471 = vmatpush.bf16.msra.mxu2 %v2881_v57  ;;  %v3266_v56 = vld [vmem:[#allocation2 + $0x58] sm:$0xf]  ;;  %v2734_v57 = vld [vmem:[#allocation2 + $0x78] sm:$0xf0]  ;;  %v3287_v58 = vld [vmem:[#allocation2 + $0x250] sm:$0xf] }
  0xce   : > { %v2737_v59 = vor.u32 %v3266_v56, %v2734_v57  ;;  %v2821_v63 = vor.u32 %v3287_v58, %v2818_v60  ;;  %v3292_v54 = vld [vmem:[#allocation2 + $0x2bc] sm:$0xf0] }
  0xcf   : > { %v3434_v23 = vpop.eup %3433  ;;  %v933_v17 = vpop.f32.mrf.mxu2  ;;  %1435 = vmatpush.bf16.msrb.mxu3 %v2745_v61  ;;  %v2788_v61 = vld [vmem:[#allocation2 + $0x17c] sm:$0xf]  ;;  %v2837_v57 = vor.u32 %v3292_v54, %v2836_v53  ;;  %v3018_v53 = vld [vmem:[#allocation2 + $0x1c8] sm:$0xf] }
  0xd0   : > { %v979_v7 = vadd.f32 1.0, %v3434_v23  ;;  %v934_v22 = vadd.f32 %v933_v17, %v637_v8  ;;  %v946_v24 = vpop.f32.mrf.mxu3  ;;  %v2866_v23 = vld [vmem:[#allocation2 + $0x390] sm:$0xf0]  ;;  %v3275_v8 = vld [vmem:[#allocation2 + $0x130] sm:$0xf]  ;;  %v2789_v0 = vor.u32 %v3280_v62, %v2788_v61 }
  0xd1   : > { %v2869_v3 = vor.u32 %v3299_v1, %v2866_v23  ;;  %v2773_v11 = vor.u32 %v3275_v8, %v2770_v9  ;;  %v2908_v1 = vld [vmem:[#allocation2 + $0x44c] sm:$0xf]  ;;  %v3277_v8 = vld [vmem:[#allocation2 + $0x154] sm:$0xf0]  ;;  %v2896_v9 = vld [vmem:[#allocation2 + $0x404] sm:$0xf] }
  0xd2   : > { %3435 = vrcp.f32 %v979_v7  ;;  %v3731_v28 = vadd.f32 %v946_v24, %v934_v22  ;;  %v991_v34 = vand.u32 2147483648, %v979_v7  ;;  %v989_v37 = vand.u32 2147483647, %v979_v7  ;;  %v2840_v22 = vld [vmem:[#allocation2 + $0x2dc] sm:$0xf] }
  0xd3   : > { %vm985_vm1 = vweird.f32 %v979_v7  ;;  %1472 = vmatpush.bf16.msra.mxu2 %v2869_v3  ;;  %1436 = vmatpush.bf16.msrb.mxu3 %v2733_v6  ;;  %v2909_v23 = vor.u32 %v3310_v2, %v2908_v1  ;;  %v3745_v3 = vld [vmem:[%s3889_s11] sm:$0xff]  ;;  %v2725_v6 = vor.u32 %v3263_v4, %v2722_v5 }
  0xd4   : > { %v992_v39 = vor.u32 1.1754944e-38, %v991_v34  ;;  %vm990_vm3 = vcmp.eq.f32.partialorder %v989_v37, 8.507059e+37  ;;  %1459 = vmatpush.bf16.msra.mxu1 %v2773_v11  ;;  %v2685_v15 = vmul.f32 -1.442695, %v3731_v28  ;;  %v3293_v34 = vld [vmem:[#allocation2 + $0x2e0] sm:$0xf] }
  0xd5   : > { %v2812_v28 = vld [vmem:[#allocation2 + $0x20c] sm:$0xf]  ;;  %v3286_v37 = vld [vmem:[#allocation2 + $0x22c] sm:$0xf0]  ;;  %v3307_v11 = vld [vmem:[#allocation2 + $0x424] sm:$0xf0] }
  0xd6   : > { %3437 = vpow2.f32 %v2685_v15  ;;  %v2897_v13 = vor.u32 %v3307_v11, %v2896_v9  ;;  %v3274_v15 = vld [vmem:[#allocation2 + $0x10c] sm:$0xf0]  ;;  %v2938_v9 = vld [vmem:[#allocation4 + $0x94] sm:$0xf] }
  0xd7   : > { %v935_v33 = vpop.f32.mrf.mxu2  ;;  %1473 = vmatpush.bf16.msra.mxu2 %v2857_v14  ;;  %1437 = vmatpush.bf16.msrb.mxu3 %v2721_v27  ;;  %v2764_v14 = vld [vmem:[#allocation2 + $0xec] sm:$0xf]  ;;  %v3271_v27 = vld [vmem:[#allocation2 + $0xc4] sm:$0xf0] }
  0xd8   : > { %v3436_v30 = vpop.eup %3435  ;;  %v948_v35 = vpop.f32.mrf.mxu3  ;;  %v2765_v21 = vor.u32 %v3274_v15, %v2764_v14  ;;  %v2930_v15 = vld [vmem:[#allocation4 + $0x64] sm:$0xf] }
  0xd9   : > { %v981_v31 = vmul.f32 %v3436_v30, %v979_v7  ;;  %vm986_vm0 = vweird.f32 %v3436_v30  ;;  %v3297_v7 = vld [vmem:[#allocation2 + $0x344] sm:$0xf0]  ;;  %v2842_v35 = vld [vmem:[#allocation2 + $0x300] sm:$0xf0] }
  0xda   : > { %vm987_vm2 = vmor %vm985_vm1, %vm986_vm0  ;;  %v2853_v10 = vor.u32 %v3297_v7, %v2852_v25  ;;  %v3749_v25 = vpack.c.bf16 %v3745_v3, %v3745_v3  ;;  %v2776_v7 = vld [vmem:[#allocation2 + $0x134] sm:$0xf] }
  0xdb   : > { %v982_v32 = vsub.f32 1.0, %v981_v31  ;;  %v2758_v31 = vld [vmem:[#allocation2 + $0x108] sm:$0xf0] }
  0xdc   : > { %1447 = vmatpush.bf16.msra.mxu0 %v2853_v10  ;;  %v3438_v24 = vpop.eup %3437  ;;  %v2777_v10 = vor.u32 %v3277_v8, %v2776_v7  ;;  %v2942_v7 = vld [vmem:[#allocation4 + $0xac] sm:$0xf] }
  0xdd   : > { %v983_v36 = vmul.f32 %v3436_v30, %v982_v32  ;;  %v2841_v32 = vor.u32 %v3294_v29, %v2840_v22  ;;  %v3304_v22 = vld [vmem:[#allocation2 + $0x3dc] sm:$0xf0]  ;;  %v2872_v29 = vld [vmem:[#allocation2 + $0x374] sm:$0xf] }
  0xdf   : > { %v984_v38 = vadd.f32 %v3436_v30, %v983_v36  ;;  %v2845_v36 = vor.u32 %v3293_v34, %v2842_v35  ;;  %v2740_v35 = vld [vmem:[#allocation2 + $0x5c] sm:$0xf] }
  0xe0   : > { %1448 = vmatpush.bf16.msra.mxu0 %v2841_v32  ;;  %v638_v32 = vperm.slane %v3725_v44, 2  ;;  %v3295_v44 = vld [vmem:[#allocation2 + $0x304] sm:$0xf0] }
  0xe1   : > { %v988_v40 = vsel %vm987_vm2, %v3436_v30, %v984_v38  ;;  %v3272_v30 = vld [vmem:[#allocation2 + $0xe8] sm:$0xf]  ;;  %v3739_v38 = vadd.f32 1.0, %v3438_v24  ;;  %1474 = vmatpush.bf16.msra.mxu2 %v2845_v36  ;;  %v2752_v24 = vld [vmem:[#allocation2 + $0xa4] sm:$0xf] }
  0xe2   : > { %v993_v41 = vsel %vm990_vm3, %v992_v39, %v988_v40  ;;  %v2761_v33 = vor.u32 %v3272_v30, %v2758_v31  ;;  %v2813_v39 = vor.u32 %v3286_v37, %v2812_v28  ;;  %v2828_v40 = vld [vmem:[#allocation2 + $0x294] sm:$0xf]  ;;  %v3301_v30 = vld [vmem:[#allocation2 + $0x394] sm:$0xf0]  ;;  %v3268_v28 = vld [vmem:[#allocation2 + $0x7c] sm:$0xf0] }
  0xe3   : > { %v1014_v42 = vmul.f32 %v993_v41, %v3710_v20  ;;  %v3735_v16 = vpop.f32.mrf.mxu0  ;;  %v3737_v17 = vpop.f32.mrf.mxu1  ;;  %v3291_v41 = vld [vmem:[#allocation2 + $0x2b4] sm:$0xf0]  ;;  %3439 = vrcp.f32 %v3739_v38  ;;  %v2873_v34 = vor.u32 %v3301_v30, %v2872_v29  ;;  %v2860_v36 = vld [vmem:[#allocation2 + $0x32c] sm:$0xf]  ;;  %v3298_v37 = vld [vmem:[#allocation2 + $0x34c] sm:$0xf0]  ;;  %vm1004_vm4 = vweird.f32 %v3739_v38 }
  0xe4   : > { %1460 = vmatpush.bf16.msra.mxu1 %v2761_v33  ;;  %1482 = vmatpush.bf16.msra.mxu3 %v2813_v39  ;;  %v2753_v33 = vor.u32 %v3271_v27, %v2752_v24  ;;  %v1008_v49 = vand.u32 2147483647, %v3739_v38  ;;  %v3314_v24 = vld [vmem:[#allocation4 + $0x54] sm:$0xf0]  ;;  %v2922_v30 = vld [vmem:[#allocation4 + $0x34] sm:$0xf] }
  0xe5   : > { %v1015_v43 = vpack.c.bf16 %v1014_v42, %v1014_v42  ;;  %v2829_v42 = vor.u32 %v3291_v41, %v2828_v40  ;;  %1475 = vmatpush.bf16.msra.mxu2 %v2833_v51  ;;  %v2741_v40 = vor.u32 %v3268_v28, %v2740_v35  ;;  %v2861_v41 = vor.u32 %v3298_v37, %v2860_v36  ;;  %v2914_v37 = vld [vmem:[#allocation4 + $0x4] sm:$0xf] }
  0xe6   : > { %v2849_v51 = vor.u32 %v3295_v44, %v2848_v46  ;;  %vm1009_vm7 = vcmp.eq.f32.partialorder %v1008_v49, 8.507059e+37  ;;  %v3030_v49 = vld [vmem:[#allocation2 + $0x210] sm:$0xf] }
  0xe7   : > { %1088 = vmatmul.bf16.vlgmr.msrb.gmra.mxu2 %v1015_v43  ;;  %v3269_v43 = vld [vmem:[#allocation2 + $0xa0] sm:$0xf]  ;;  %1449 = vmatpush.bf16.msra.mxu0 %v2829_v42  ;;  %v2728_v42 = vld [vmem:[#allocation2 + $0x14] sm:$0xf] }
  0xe8   : > { %v2749_v47 = vor.u32 %v3269_v43, %v2746_v45  ;;  %1483 = vmatpush.bf16.msra.mxu3 %v2801_v52  ;;  %v960_v43 = vadd.f32 %v3735_v16, %v638_v32  ;;  %v3265_v45 = vld [vmem:[#allocation2 + $0x34] sm:$0xf0] }
  0xe9   : > { %1476 = vmatpush.bf16.msra.mxu2 %v2821_v63  ;;  %v3751_v12 = vpop.eup %3439  ;;  %v2729_v50 = vor.u32 %v3265_v45, %v2728_v42 }
  0xea   : > { %1461 = vmatpush.bf16.msra.mxu1 %v2749_v47  ;;  %v1000_v19 = vmul.f32 %v3751_v12, %v3739_v38  ;;  %vm1005_vm5 = vweird.f32 %v3751_v12  ;;  %v1010_v47 = vand.u32 2147483648, %v3739_v38  ;;  %v973_v52 = vadd.f32 %v3737_v17, %v960_v43  ;;  %v3289_v38 = vld [vmem:[#allocation2 + $0x274] sm:$0xf0] }
  0xeb   : > { %v961_v18 = vpop.f32.mrf.mxu0  ;;  %v974_v26 = vpop.f32.mrf.mxu1  ;;  %1450 = vmatpush.bf16.msra.mxu0 %v2817_v55  ;;  %vm1006_vm6 = vmor %vm1004_vm4, %vm1005_vm5 }
  0xec   : > { %1484 = vmatpush.bf16.msra.mxu3 %v2789_v0  ;;  %v2884_v18 = vld [vmem:[#allocation2 + $0x3bc] sm:$0xf]  ;;  %v1001_v31 = vsub.f32 1.0, %v1000_v19  ;;  %v1011_v16 = vor.u32 1.1754944e-38, %v1010_v47 }
  0xed   : > { %v2885_v26 = vor.u32 %v3304_v22, %v2884_v18  ;;  %v3315_v18 = vld [vmem:[#allocation4 + $0x6c] sm:$0xf0]  ;;  %v2926_v22 = vld [vmem:[#allocation4 + $0x4c] sm:$0xf] }
  0xee   : > { %1462 = vmatpush.bf16.msra.mxu1 %v2737_v59  ;;  %1451 = vmatmul.bf16.vlgmr.msra.gmra.mxu0 %v3749_v25  ;;  %v1002_v39 = vmul.f32 %v3751_v12, %v1001_v31  ;;  %v2824_v59 = vld [vmem:[#allocation2 + $0x254] sm:$0xf]  ;;  %v2931_v19 = vor.u32 %v3315_v18, %v2930_v15  ;;  %v2927_v27 = vor.u32 %v3314_v24, %v2926_v22  ;;  %v3313_v31 = vld [vmem:[#allocation4 + $0x3c] sm:$0xf0]  ;;  %v3361_v18 = vld [vmem:[#allocation2 + $0x40c] sm:$0xf] }
  0xef   : > { %1495 = vmatpush.bf16.msrb.mxu0 %v2909_v23  ;;  %v2825_v61 = vor.u32 %v3289_v38, %v2824_v59  ;;  %v2923_v32 = vor.u32 %v3313_v31, %v2922_v30  ;;  %v2982_v24 = vld [vmem:[#allocation2 + $0xf0] sm:$0xf]  ;;  %v3329_v31 = vld [vmem:[#allocation2 + $0x110] sm:$0xf0] }
  0xf0   : > { %1485 = vmatpush.bf16.msra.mxu3 %v2777_v10  ;;  %v1003_v48 = vadd.f32 %v3751_v12, %v1002_v39  ;;  %v3317_v10 = vld [vmem:[#allocation4 + $0x9c] sm:$0xf0]  ;;  %v3311_v39 = vld [vmem:[#allocation4 + $0xc] sm:$0xf0] }
  0xf1   : > { %v2939_v11 = vor.u32 %v3317_v10, %v2938_v9  ;;  %v2915_v43 = vor.u32 %v3311_v39, %v2914_v37  ;;  %v3090_v9 = vld [vmem:[#allocation2 + $0x378] sm:$0xf]  ;;  %v3104_v37 = vld [vmem:[#allocation2 + $0x3e4] sm:$0xf0] }
  0xf2   : > { %1463 = vmatpush.bf16.msra.mxu1 %v2725_v6  ;;  %v1007_v55 = vsel %vm1006_vm6, %v3751_v12, %v1003_v48  ;;  %v2934_v12 = vld [vmem:[#allocation4 + $0x7c] sm:$0xf] }
  0xf3   : > { %1496 = vmatpush.bf16.msrb.mxu0 %v2897_v13  ;;  %v1012_v60 = vsel %vm1009_vm7, %v1011_v16, %v1007_v55  ;;  %v3316_v13 = vld [vmem:[#allocation4 + $0x84] sm:$0xf0]  ;;  %v3365_v16 = vld [vmem:[#allocation2 + $0x470] sm:$0xf0]  ;;  %v3338_v55 = vld [vmem:[#allocation2 + $0x1e8] sm:$0xf0] }
  0xf4   : > { %1486 = vmatpush.bf16.msra.mxu3 %v2765_v21  ;;  %v1095_v62 = vsub.f32 1.0, %v1012_v60  ;;  %v2935_v14 = vor.u32 %v3316_v13, %v2934_v12  ;;  %v3780_v21 = vld [vmem:[%s3884_s6 + $0x3] sm:$0x7]  ;;  %v3019_v59 = vor.u32 %v3338_v55, %v3018_v53  ;;  %v3020_v12 = vld [vmem:[#allocation2 + $0x1ec] sm:$0xf0] }
  0xf5   : > { %v1169_v29 = vperm.slane %v3780_v21, 1  ;;  %v2958_v55 = vld [vmem:[#allocation2 + $0x60] sm:$0xf] }
  0xf6   : > { %v1096_v1 = vmul.f32 %v1095_v62, %v3710_v20  ;;  %v3318_v20 = vld [vmem:[#allocation4 + $0xb4] sm:$0xf0]  ;;  %v3102_v62 = vld [vmem:[#allocation2 + $0x3c0] sm:$0xf] }
  0xf7   : > { %1477 = vmatmul.bf16.vlgmr.msra.gmra.mxu2 %v3749_v25  ;;  %1497 = vmatpush.bf16.msrb.mxu0 %v2885_v26  ;;  %v2943_v8 = vor.u32 %v3318_v20, %v2942_v7  ;;  %v3332_v7 = vld [vmem:[#allocation2 + $0x158] sm:$0xf0]  ;;  %v3128_v20 = vld [vmem:[#allocation2 + $0x474] sm:$0xf0] }
  0xf8   : > { %1487 = vmatpush.bf16.msra.mxu3 %v2753_v33  ;;  %v2918_v33 = vld [vmem:[#allocation4 + $0x1c] sm:$0xf] }
  0xf9   : > { %1612 = vmatpush.bf16.msrb.mxu1 %v2943_v8 }
  0xfb   : > { %1498 = vmatpush.bf16.msrb.mxu0 %v2873_v34  ;;  %v3312_v34 = vld [vmem:[#allocation4 + $0x24] sm:$0xf0] }
  0xfc   : > { %1488 = vmatpush.bf16.msra.mxu3 %v2741_v40  ;;  %v2919_v36 = vor.u32 %v3312_v34, %v2918_v33  ;;  %v3008_v34 = vld [vmem:[#allocation2 + $0x1a4] sm:$0xf0] }
  0xfd   : > { %1613 = vmatpush.bf16.msrb.mxu1 %v2939_v11  ;;  %v3337_v11 = vld [vmem:[#allocation2 + $0x1cc] sm:$0xf] }
  0xfe   : > { %v3023_v15 = vor.u32 %v3337_v11, %v3020_v12 }
  0xff   : > { %1499 = vmatpush.bf16.msrb.mxu0 %v2861_v41  ;;  %v1168_v41 = vperm.slane %v3780_v21, 0 }
 0x100   : > { %1489 = vmatpush.bf16.msra.mxu3 %v2729_v50  ;;  %v3341_v50 = vld [vmem:[#allocation2 + $0x230] sm:$0xf0] }
 0x101   : > { %1614 = vmatpush.bf16.msrb.mxu1 %v2935_v14  ;;  %v3356_v14 = vld [vmem:[#allocation2 + $0x398] sm:$0xf0] }
 0x102   : > { %v3091_v30 = vor.u32 %v3356_v14, %v3090_v9  ;;  %v2946_v9 = vld [vmem:[#allocation2 + $0x18] sm:$0xf] }
 0x103   : > { %1500 = vmatpush.bf16.msrb.mxu0 %v2849_v51  ;;  %v3031_v51 = vor.u32 %v3341_v50, %v3030_v49  ;;  %v3066_v50 = vld [vmem:[#allocation2 + $0x2e8] sm:$0xf]  ;;  %v3038_v14 = vld [vmem:[#allocation2 + $0x218] sm:$0xf] }
 0x105   : > { %1615 = vmatpush.bf16.msrb.mxu1 %v2931_v19  ;;  %1963 = vmatpush.bf16.msrb.mxu2 %v3031_v51  ;;  %v3116_v19 = vld [vmem:[#allocation2 + $0x42c] sm:$0xf0]  ;;  %v3350_v51 = vld [vmem:[#allocation2 + $0x308] sm:$0xf0] }
 0x106   : > { %v3119_v33 = vor.u32 %v3361_v18, %v3116_v19  ;;  %v3342_v18 = vld [vmem:[#allocation2 + $0x238] sm:$0xf0]  ;;  %v3042_v19 = vld [vmem:[#allocation2 + $0x258] sm:$0xf] }
 0x107   : > { %1501 = vmatpush.bf16.msrb.mxu0 %v2837_v57  ;;  %v3362_v57 = vld [vmem:[#allocation2 + $0x428] sm:$0xf0] }
 0x109   : > { %1616 = vmatpush.bf16.msrb.mxu1 %v2927_v27  ;;  %1964 = vmatpush.bf16.msrb.mxu2 %v3019_v59  ;;  %v3334_v27 = vld [vmem:[#allocation2 + $0x184] sm:$0xf] }
 0x10b   : > { %1502 = vmatpush.bf16.msrb.mxu0 %v2825_v61  ;;  %v3335_v61 = vld [vmem:[#allocation2 + $0x1a0] sm:$0xf0] }
 0x10d   : > { %1617 = vmatpush.bf16.msrb.mxu1 %v2923_v32  ;;  %v3078_v32 = vld [vmem:[#allocation2 + $0x330] sm:$0xf] }
 0x10e   : > { %1503 = vmatmul.bf16.vlgmr.msrb.gmra.mxu0 %v3749_v25 }
 0x111   : > { %1618 = vmatpush.bf16.msrb.mxu1 %v2919_v36  ;;  %v3358_v36 = vld [vmem:[#allocation2 + $0x3c4] sm:$0xf] }
 0x115   : > { %1619 = vmatpush.bf16.msrb.mxu1 %v2915_v43  ;;  %v3331_v43 = vld [vmem:[#allocation2 + $0x13c] sm:$0xf] }
 0x16a   : > { %v1089_v56 = vpop.f32.mrf.mxu2 }
 0x16b   : > { %v1093_v58 = vadd.f32 %v1089_v56, %v973_v52  ;;  %v1452_v4 = vpop.f32.mrf.mxu0  ;;  %v3126_v52 = vld [vmem:[#allocation2 + $0x450] sm:$0xf]  ;;  %v3114_v56 = vld [vmem:[#allocation2 + $0x408] sm:$0xf] }
 0x16c   : > { %v3127_v54 = vor.u32 %v3365_v16, %v3126_v52  ;;  %v3115_v38 = vor.u32 %v3362_v57, %v3114_v56  ;;  %v3323_v56 = vld [vmem:[#allocation2 + $0x80] sm:$0xf0] }
 0x16d   : > { %3441 = vtanh.f32 %v1093_v58 }
 0x172   : > { %v1091_v17 = vpop.f32.mrf.mxu2 }
 0x173   : > { %v3442_v63 = vpop.eup %3441  ;;  %v1454_v6 = vpop.f32.mrf.mxu0  ;;  %v3359_v17 = vld [vmem:[#allocation2 + $0x3e0] sm:$0xf0] }
 0x174   : > { %v1097_v0 = vmul.f32 %v3442_v63, %v1012_v60  ;;  %v3006_v60 = vld [vmem:[#allocation2 + $0x180] sm:$0xf]  ;;  %v3340_v63 = vld [vmem:[#allocation2 + $0x214] sm:$0xf]  ;;  %v2994_v6 = vld [vmem:[#allocation2 + $0x138] sm:$0xf] }
 0x175   : > { %v2995_v22 = vor.u32 %v3332_v7, %v2994_v6  ;;  %v3347_v6 = vld [vmem:[#allocation2 + $0x2c0] sm:$0xf0] }
 0x176   : > { %v3769_v2 = vadd.f32 %v1097_v0, %v1096_v1  ;;  %v3032_v0 = vld [vmem:[#allocation2 + $0x234] sm:$0xf0]  ;;  %v1170_v1 = vperm.slane %v3780_v21, 2 }
 0x178   : > { %v1100_v23 = vpack.c.bf16 %v3769_v2, %v3769_v2  ;;  %2248 = vst [vmem:[%s3888_s10] sm:$0xff] %v3769_v2 }
 0x17a   : > { %1438 = vmatmul.bf16.vlgmr.msrb.gmra.mxu3 %v1100_v23  ;;  %1464 = vmatmul.bf16.vlgmr.msra.gmra.mxu1 %v1100_v23  ;;  %v1478_v5 = vpop.f32.mrf.mxu2 }
 0x17b   : > { %1976 = vmatpush.bf16.msrb.mxu3 %v3127_v54  ;;  %v3067_v54 = vor.u32 %v3350_v51, %v3066_v50  ;;  %v2960_v50 = vld [vmem:[#allocation2 + $0x84] sm:$0xf0] }
 0x17c   : > { %v3014_v51 = vld [vmem:[#allocation2 + $0x188] sm:$0xf] }
 0x17f   : > { %1977 = vmatpush.bf16.msrb.mxu3 %v3115_v38  ;;  %v2959_v38 = vor.u32 %v3323_v56, %v2958_v55 }
 0x182   : > { %v1480_v25 = vpop.f32.mrf.mxu2 }
 0x183   : > { %v3103_v25 = vor.u32 %v3359_v17, %v3102_v62 }
 0x185   : > { %1978 = vmatpush.bf16.msrb.mxu3 %v3103_v25 }
 0x189   : > { %1979 = vmatpush.bf16.msrb.mxu3 %v3091_v30  ;;  %v3134_v30 = vld [vmem:[#allocation2 + $0x458] sm:$0xf] }
 0x18a   : > { %1490 = vmatmul.bf16.vlgmr.msra.gmra.mxu3 %v1100_v23  ;;  %v3035_v23 = vor.u32 %v3340_v63, %v3032_v0 }
 0x18b   : > { %v3782_v26 = vpop.f32.mrf.mxu0 }
 0x18c   : > { %1989 = vmatpush.bf16.msra.mxu0 %v3035_v23 }
 0x190   : > { %1990 = vmatpush.bf16.msra.mxu0 %v3023_v15 }
 0x193   : > { %v1506_v42 = vpop.f32.mrf.mxu0 }
 0x194   : > { %v2983_v42 = vor.u32 %v3329_v31, %v2982_v24 }
 0x1f7   : > { %v1465_v35 = vpop.f32.mrf.mxu1 }
 0x1f8   : > { %v1466_v28 = vadd.f32 %v1465_v35, %v1169_v29  ;;  %v3353_v35 = vld [vmem:[#allocation2 + $0x350] sm:$0xf0] }
 0x1fa   : > { %v3785_v40 = vadd.f32 %v1478_v5, %v1466_v28  ;;  %v3007_v5 = vor.u32 %v3335_v61, %v3006_v60  ;;  %v3011_v28 = vor.u32 %v3334_v27, %v3008_v34  ;;  %v3352_v27 = vld [vmem:[#allocation2 + $0x334] sm:$0xf]  ;;  %v3325_v34 = vld [vmem:[#allocation2 + $0xac] sm:$0xf] }
 0x1fc   : > { %1965 = vmatpush.bf16.msrb.mxu2 %v3007_v5  ;;  %1991 = vmatpush.bf16.msra.mxu0 %v3011_v28  ;;  %v3054_v5 = vld [vmem:[#allocation2 + $0x2a0] sm:$0xf] }
 0x1fd   : > { %v1439_v45 = vpop.f32.mrf.mxu3  ;;  %v3055_v7 = vor.u32 %v3347_v6, %v3054_v5  ;;  %v3098_v5 = vld [vmem:[#allocation2 + $0x380] sm:$0xf]  ;;  %v3357_v6 = vld [vmem:[#allocation2 + $0x3a0] sm:$0xf0] }
 0x1fe   : > { %v1440_v46 = vadd.f32 %v1439_v45, %v1168_v41  ;;  %v3107_v41 = vor.u32 %v3358_v36, %v3104_v37  ;;  %v2996_v45 = vld [vmem:[#allocation2 + $0x15c] sm:$0xf0]  ;;  %v3026_v37 = vld [vmem:[#allocation2 + $0x1d0] sm:$0xf] }
 0x1ff   : > { %v1467_v44 = vpop.f32.mrf.mxu1 }
 0x200   : > { %v1453_v47 = vadd.f32 %v1452_v4, %v1440_v46  ;;  %v3364_v4 = vld [vmem:[#allocation2 + $0x454] sm:$0xf]  ;;  %1966 = vmatpush.bf16.msrb.mxu2 %v2995_v22  ;;  %v3079_v46 = vor.u32 %v3353_v35, %v3078_v32  ;;  %v2970_v44 = vld [vmem:[#allocation2 + $0xa8] sm:$0xf]  ;;  %v3039_v22 = vor.u32 %v3342_v18, %v3038_v14  ;;  %v2972_v35 = vld [vmem:[#allocation2 + $0xcc] sm:$0xf0] }
 0x201   : > { %v3131_v10 = vor.u32 %v3364_v4, %v3128_v20  ;;  %v3355_v20 = vld [vmem:[#allocation2 + $0x37c] sm:$0xf]  ;;  %v2975_v36 = vor.u32 %v3325_v34, %v2972_v35  ;;  %v2978_v14 = vld [vmem:[#allocation2 + $0xb0] sm:$0xf] }
 0x202   : > { %v2910_v48 = vmul.f32 -1.442695, %v1453_v47  ;;  %v3326_v47 = vld [vmem:[#allocation2 + $0xc8] sm:$0xf0]  ;;  %1980 = vmatpush.bf16.msrb.mxu3 %v3079_v46  ;;  %v3122_v46 = vld [vmem:[#allocation2 + $0x410] sm:$0xf] }
 0x203   : > { %2002 = vmatpush.bf16.msra.mxu1 %v3131_v10  ;;  %v2971_v16 = vor.u32 %v3326_v47, %v2970_v44  ;;  %v3320_v10 = vld [vmem:[#allocation2 + $0x38] sm:$0xf0]  ;;  %v3363_v44 = vld [vmem:[#allocation2 + $0x430] sm:$0xf0] }
 0x204   : > { %3443 = vpow2.f32 %v2910_v48  ;;  %v2999_v48 = vor.u32 %v3331_v43, %v2996_v45  ;;  %1967 = vmatpush.bf16.msrb.mxu2 %v2983_v42  ;;  %v2947_v12 = vor.u32 %v3320_v10, %v2946_v9  ;;  %v3349_v42 = vld [vmem:[#allocation2 + $0x2ec] sm:$0xf]  ;;  %v3068_v45 = vld [vmem:[#allocation2 + $0x30c] sm:$0xf0]  ;;  %v3099_v10 = vor.u32 %v3357_v6, %v3098_v5 }
 0x205   : > { %v1441_v58 = vpop.f32.mrf.mxu3  ;;  %v3071_v47 = vor.u32 %v3349_v42, %v3068_v45  ;;  %v2954_v42 = vld [vmem:[#allocation2 + $0x20] sm:$0xf] }
 0x206   : > { %1992 = vmatpush.bf16.msra.mxu0 %v2999_v48  ;;  %1981 = vmatpush.bf16.msrb.mxu3 %v3067_v54  ;;  %v3123_v48 = vor.u32 %v3363_v44, %v3122_v46  ;;  %v3346_v54 = vld [vmem:[#allocation2 + $0x2a4] sm:$0xf]  ;;  %v3050_v46 = vld [vmem:[#allocation2 + $0x260] sm:$0xf] }
 0x207   : > { %2003 = vmatpush.bf16.msra.mxu1 %v3119_v33  ;;  %v3366_v33 = vld [vmem:[#allocation2 + $0x478] sm:$0xf0]  ;;  %v3345_v44 = vld [vmem:[#allocation2 + $0x280] sm:$0xf0] }
 0x208   : > { %1968 = vmatpush.bf16.msrb.mxu2 %v2971_v16  ;;  %v3135_v28 = vor.u32 %v3366_v33, %v3134_v30  ;;  %v3336_v16 = vld [vmem:[#allocation2 + $0x1a8] sm:$0xf0]  ;;  %v2966_v30 = vld [vmem:[#allocation2 + $0x68] sm:$0xf] }
 0x209   : > { %v3015_v55 = vor.u32 %v3336_v16, %v3014_v51 }
 0x20a   : > { %v3444_v8 = vpop.eup %3443  ;;  %1982 = vmatpush.bf16.msrb.mxu3 %v3055_v7 }
 0x20b   : > { %v3789_v13 = vadd.f32 1.0, %v3444_v8  ;;  %2004 = vmatpush.bf16.msra.mxu1 %v3107_v41  ;;  %v3092_v8 = vld [vmem:[#allocation2 + $0x39c] sm:$0xf0]  ;;  %v3339_v41 = vld [vmem:[#allocation2 + $0x1f0] sm:$0xf0] }
 0x20c   : > { %1969 = vmatpush.bf16.msrb.mxu2 %v2959_v38  ;;  %v3095_v25 = vor.u32 %v3355_v20, %v3092_v8  ;;  %v3027_v43 = vor.u32 %v3339_v41, %v3026_v37  ;;  %v2990_v8 = vld [vmem:[#allocation2 + $0xf8] sm:$0xf]  ;;  %v3348_v37 = vld [vmem:[#allocation2 + $0x2c8] sm:$0xf0] }
 0x20d   : > { %3445 = vrcp.f32 %v3789_v13  ;;  %v1491_v21 = vpop.f32.mrf.mxu3  ;;  %v1523_v57 = vand.u32 2147483648, %v3789_v13  ;;  %v1521_v59 = vand.u32 2147483647, %v3789_v13  ;;  %vm1517_vm9 = vweird.f32 %v3789_v13 }
 0x20e   : > { %v1492_v29 = vadd.f32 %v1491_v21, %v1170_v1  ;;  %v2911_v1 = vmul.f32 -1.442695, %v3785_v40  ;;  %v2984_v40 = vld [vmem:[#allocation2 + $0x114] sm:$0xf0]  ;;  %v3344_v21 = vld [vmem:[#allocation2 + $0x278] sm:$0xf0] }
 0x20f   : > { %v1524_v61 = vor.u32 1.1754944e-38, %v1523_v57  ;;  %vm1522_vm11 = vcmp.eq.f32.partialorder %v1521_v59, 8.507059e+37  ;;  %2005 = vmatpush.bf16.msra.mxu1 %v3095_v25  ;;  %v3043_v24 = vor.u32 %v3344_v21, %v3042_v19  ;;  %v3056_v57 = vld [vmem:[#allocation2 + $0x2c4] sm:$0xf0]  ;;  %v3360_v59 = vld [vmem:[#allocation2 + $0x3e8] sm:$0xf0] }
 0x210   : > { %v3793_v39 = vadd.f32 %v3782_v26, %v1492_v29  ;;  %3447 = vpow2.f32 %v2911_v1  ;;  %1970 = vmatpush.bf16.msrb.mxu2 %v2947_v12  ;;  %v3080_v29 = vld [vmem:[#allocation2 + $0x354] sm:$0xf0]  ;;  %v3059_v38 = vor.u32 %v3346_v54, %v3056_v57  ;;  %v3044_v1 = vld [vmem:[#allocation2 + $0x27c] sm:$0xf0]  ;;  %v3330_v25 = vld [vmem:[#allocation2 + $0x118] sm:$0xf0] }
 0x211   : > { %v3083_v32 = vor.u32 %v3352_v27, %v3080_v29  ;;  %1983 = vmatpush.bf16.msrb.mxu3 %v3043_v24  ;;  %v3086_v12 = vld [vmem:[#allocation2 + $0x338] sm:$0xf]  ;;  %v3351_v24 = vld [vmem:[#allocation2 + $0x310] sm:$0xf0] }
 0x213   : > { %v3446_v49 = vpop.eup %3445  ;;  %2006 = vmatpush.bf16.msra.mxu1 %v3083_v32 }
 0x214   : > { %v1513_v52 = vmul.f32 %v3446_v49, %v3789_v13  ;;  %vm1518_vm8 = vweird.f32 %v3446_v49  ;;  %v3328_v13 = vld [vmem:[#allocation2 + $0xf4] sm:$0xf]  ;;  %2015 = vmatpush.bf16.msra.mxu2 %v3039_v22  ;;  %v3074_v22 = vld [vmem:[#allocation2 + $0x2f0] sm:$0xf] }
 0x215   : > { %v1493_v26 = vpop.f32.mrf.mxu3  ;;  %vm1519_vm10 = vmor %vm1517_vm9, %vm1518_vm8  ;;  %v2987_v15 = vor.u32 %v3328_v13, %v2984_v40  ;;  %2028 = vmatpush.bf16.msra.mxu3 %v3135_v28  ;;  %v3354_v13 = vld [vmem:[#allocation2 + $0x358] sm:$0xf0]  ;;  %v2991_v40 = vor.u32 %v3330_v25, %v2990_v8  ;;  %v3075_v34 = vor.u32 %v3351_v24, %v3074_v22  ;;  %vm2246_vm8 = vcmask 64512  }
 0x216   : > { %v1514_v53 = vsub.f32 1.0, %v1513_v52  ;;  %v3448_v23 = vpop.eup %3447  ;;  %v3087_v19 = vor.u32 %v3354_v13, %v3086_v12  ;;  %v3148_v13 = vld [vmem:[#allocation4 + $0x38] sm:$0xf] }
 0x217   : > { %v3801_v4 = vadd.f32 1.0, %v3448_v23  ;;  %1993 = vmatpush.bf16.msra.mxu0 %v2987_v15  ;;  %2007 = vmatpush.bf16.msra.mxu1 %v3071_v47  ;;  %v3327_v15 = vld [vmem:[#allocation2 + $0xd0] sm:$0xf0] }
 0x218   : > { %v1515_v58 = vmul.f32 %v3446_v49, %v1514_v53  ;;  %v3811_v53 = vld [vmem:[%s3890_s12] sm:$0xff]  ;;  %2016 = vmatpush.bf16.msra.mxu2 %v3027_v43  ;;  %v2979_v29 = vor.u32 %v3327_v15, %v2978_v14 }
 0x219   : > { %3449 = vrcp.f32 %v3801_v4  ;;  %v3815_v56 = vpack.c.bf16 %v3811_v53, %v3811_v53  ;;  %2029 = vmatpush.bf16.msra.mxu3 %v3123_v48  ;;  %v1542_v21 = vand.u32 2147483648, %v3801_v4  ;;  %vm1536_vm13 = vweird.f32 %v3801_v4  ;;  %v3321_v43 = vld [vmem:[#allocation2 + $0x40] sm:$0xf0] }
 0x21a   : > { %v1516_v60 = vadd.f32 %v3446_v49, %v1515_v58  ;;  %v3110_v58 = vld [vmem:[#allocation2 + $0x3c8] sm:$0xf]  ;;  %v1540_v27 = vand.u32 2147483647, %v3801_v4  ;;  %v2955_v47 = vor.u32 %v3321_v43, %v2954_v42  ;;  %v3379_v42 = vld [vmem:[%s3885_s7 + $0x20] sm:$0xff] }
 0x21b   : > { %1994 = vmatpush.bf16.msra.mxu0 %v2975_v36  ;;  %1984 = vmatmul.bf16.vlgmr.msrb.gmra.mxu3 %v3815_v56  ;;  %v1543_v35 = vor.u32 1.1754944e-38, %v1542_v21  ;;  %v3062_v36 = vld [vmem:[#allocation2 + $0x2a8] sm:$0xf]  ;;  %v3368_v21 = vld [vmem:[#allocation4 + $0x28] sm:$0xf0] }
 0x21c   : > { %v1520_v62 = vsel %vm1519_vm10, %v3446_v49, %v1516_v60  ;;  %v3322_v49 = vld [vmem:[#allocation2 + $0x64] sm:$0xf]  ;;  %v3319_v60 = vld [vmem:[#allocation2 + $0x1c] sm:$0xf]  ;;  %2017 = vmatpush.bf16.msra.mxu2 %v3015_v55  ;;  %2008 = vmatpush.bf16.msra.mxu1 %v3059_v38  ;;  %vm1541_vm15 = vcmp.eq.f32.partialorder %v1540_v27, 8.507059e+37  ;;  %v3063_v45 = vor.u32 %v3348_v37, %v3062_v36  ;;  %v3380_v36 = vld [vmem:[%s3885_s7 + $0x28] sm:$0xff] }
 0x21d   : > { %v1525_v17 = vsel %vm1522_vm11, %v1524_v61, %v1520_v62  ;;  %v2963_v26 = vor.u32 %v3322_v49, %v2960_v50  ;;  %v2948_v61 = vld [vmem:[#allocation2 + $0x3c] sm:$0xf0]  ;;  %v3051_v49 = vor.u32 %v3345_v44, %v3050_v46 }
 0x21e   : > { %v1546_v63 = vmul.f32 %v1525_v17, %v3745_v3  ;;  %v3002_v62 = vld [vmem:[#allocation2 + $0x140] sm:$0xf]  ;;  %v3111_v17 = vor.u32 %v3360_v59, %v3110_v58  ;;  %v2951_v23 = vor.u32 %v3319_v60, %v2948_v61  ;;  %v3168_v58 = vld [vmem:[#allocation4 + $0xb0] sm:$0xf]  ;;  %v3164_v60 = vld [vmem:[#allocation4 + $0x98] sm:$0xf] }
 0x21f   : > { %v3804_v11 = vpop.eup %3449  ;;  %1995 = vmatpush.bf16.msra.mxu0 %v2963_v26 }
 0x220   : > { %v1547_v0 = vpack.c.bf16 %v1546_v63, %v1546_v63  ;;  %v1532_v31 = vmul.f32 %v3804_v11, %v3801_v4  ;;  %v3333_v63 = vld [vmem:[#allocation2 + $0x160] sm:$0xf0]  ;;  %2030 = vmatpush.bf16.msra.mxu3 %v3111_v17  ;;  %vm1537_vm12 = vweird.f32 %v3804_v11  ;;  %v3372_v17 = vld [vmem:[#allocation4 + $0x88] sm:$0xf0] }
 0x221   : > { %v3003_v7 = vor.u32 %v3333_v63, %v3002_v62  ;;  %vm1538_vm14 = vmor %vm1536_vm13, %vm1537_vm12  ;;  %v1699_v62 = vld [vmem:[%s3884_s6 + $0x6] sm:$0x7] }
 0x222   : > { %1620 = vmatmul.bf16.vlgmr.msrb.gmra.mxu1 %v1547_v0  ;;  %v1533_v52 = vsub.f32 1.0, %v1532_v31  ;;  %v3343_v0 = vld [vmem:[#allocation2 + $0x25c] sm:$0xf]  ;;  %v3324_v31 = vld [vmem:[#allocation2 + $0x88] sm:$0xf0] }
 0x223   : > { %v3047_v20 = vor.u32 %v3343_v0, %v3044_v1  ;;  %1996 = vmatpush.bf16.msra.mxu0 %v2951_v23  ;;  %2018 = vmatpush.bf16.msra.mxu2 %v3003_v7  ;;  %v2967_v4 = vor.u32 %v3324_v31, %v2966_v30  ;;  %v1702_v0 = vperm.slane %v1699_v62, 1  ;;  %v3156_v1 = vld [vmem:[#allocation4 + $0x68] sm:$0xf]  ;;  %v3371_v23 = vld [vmem:[#allocation4 + $0x70] sm:$0xf0] }
 0x224   : > { %v1534_v9 = vmul.f32 %v3804_v11, %v1533_v52  ;;  %2031 = vmatpush.bf16.msra.mxu3 %v3099_v10  ;;  %v3157_v6 = vor.u32 %v3371_v23, %v3156_v1  ;;  %v3152_v7 = vld [vmem:[#allocation4 + $0x50] sm:$0xf]  ;;  %v1701_v10 = vperm.slane %v1699_v62, 0  ;;  %v3367_v31 = vld [vmem:[#allocation4 + $0x10] sm:$0xf0] }
 0x225   : > { %2009 = vmatpush.bf16.msra.mxu1 %v3047_v20  ;;  %v3370_v20 = vld [vmem:[#allocation4 + $0x58] sm:$0xf0] }
 0x226   : > { %v1535_v18 = vadd.f32 %v3804_v11, %v1534_v9  ;;  %v3153_v25 = vor.u32 %v3370_v20, %v3152_v7 }
 0x227   : > { %2019 = vmatpush.bf16.msra.mxu2 %v2991_v40  ;;  %v3369_v40 = vld [vmem:[#allocation4 + $0x40] sm:$0xf0] }
 0x228   : > { %v1539_v32 = vsel %vm1538_vm14, %v3804_v11, %v1535_v18  ;;  %2032 = vmatpush.bf16.msra.mxu3 %v3087_v19  ;;  %v3149_v15 = vor.u32 %v3369_v40, %v3148_v13  ;;  %v3144_v19 = vld [vmem:[#allocation4 + $0x20] sm:$0xf] }
 0x229   : > { %v1544_v41 = vsel %vm1541_vm15, %v1543_v35, %v1539_v32  ;;  %v3145_v27 = vor.u32 %v3368_v21, %v3144_v19  ;;  %v3382_v32 = vld [vmem:[%s3885_s7 + $0x38] sm:$0xff] }
 0x22a   : > { %v1627_v11 = vsub.f32 1.0, %v1544_v41  ;;  %2233 = vmatpush.bf16.msrb.mxu1 %v3382_v32 }
 0x22b   : > { %2020 = vmatpush.bf16.msra.mxu2 %v2979_v29  ;;  %v3140_v29 = vld [vmem:[#allocation4 + $0x8] sm:$0xf] }
 0x22c   : > { %2033 = vmatpush.bf16.msra.mxu3 %v3075_v34  ;;  %v1628_v51 = vmul.f32 %v1627_v11, %v3745_v3  ;;  %v3374_v3 = vld [vmem:[#allocation4 + $0xb8] sm:$0xf0]  ;;  %v3381_v34 = vld [vmem:[%s3885_s7 + $0x30] sm:$0xff] }
 0x22d   : > { %v3169_v59 = vor.u32 %v3374_v3, %v3168_v58 }
 0x22e   : > { %2234 = vmatpush.bf16.msrb.mxu1 %v3381_v34 }
 0x22f   : > { %2021 = vmatpush.bf16.msra.mxu2 %v2967_v4  ;;  %2145 = vmatpush.bf16.msrb.mxu0 %v3169_v59  ;;  %v1703_v4 = vperm.slane %v1699_v62, 2  ;;  %v3378_v59 = vld [vmem:[%s3885_s7 + $0x18] sm:$0xff]  ;;  %v3375_v62 = vld [vmem:[%s3885_s7] sm:$0xff] }
 0x230   : > { %2034 = vmatpush.bf16.msra.mxu3 %v3063_v45 }
 0x232   : > { %2010 = vmatmul.bf16.vlgmr.msra.gmra.mxu1 %v3815_v56 }
 0x233   : > { %2022 = vmatpush.bf16.msra.mxu2 %v2955_v47  ;;  %2235 = vmatpush.bf16.msrb.mxu1 %v3380_v36 }
 0x234   : > { %2035 = vmatpush.bf16.msra.mxu3 %v3051_v49 }
 0x237   : > { %2036 = vmatmul.bf16.vlgmr.msra.gmra.mxu3 %v3815_v56  ;;  %v3160_v56 = vld [vmem:[#allocation4 + $0x80] sm:$0xf]  ;;  %2236 = vmatpush.bf16.msrb.mxu1 %v3379_v42 }
 0x238   : > { %v3161_v63 = vor.u32 %v3372_v17, %v3160_v56 }
 0x23b   : > { %2237 = vmatpush.bf16.msrb.mxu1 %v3378_v59 }
 0x29e   : > { %v1985_v54 = vpop.f32.mrf.mxu3 }
 0x29f   : > { %v1621_v33 = vpop.f32.mrf.mxu1 }
 0x2a0   : > { %v1625_v28 = vadd.f32 %v1621_v33, %v3793_v39 }
 0x2a2   : > { %3451 = vtanh.f32 %v1625_v28  ;;  %v3141_v28 = vor.u32 %v3367_v31, %v3140_v29 }
 0x2a6   : > { %v1987_v57 = vpop.f32.mrf.mxu3 }
 0x2a7   : > { %v1623_v48 = vpop.f32.mrf.mxu1 }
 0x2a8   : > { %v3452_v39 = vpop.eup %3451 }
 0x2a9   : > { %v1629_v50 = vmul.f32 %v3452_v39, %v1544_v41 }
 0x2ab   : > { %v1630_v52 = vadd.f32 %v1629_v50, %v1628_v51 }
 0x2ad   : > { %v1631_v26 = vadd.f32 %v1630_v52, %v3769_v2  ;;  %2249 = vst [vmem:[%s3889_s11] sm:$0xff] %v1630_v52  ;;  %v3373_v2 = vld [vmem:[#allocation4 + $0xa0] sm:$0xf0] }
 0x2ae   : > { %v3165_v61 = vor.u32 %v3373_v2, %v3164_v60  ;;  %v3376_v2 = vld [vmem:[%s3885_s7 + $0x8] sm:$0xff] }
 0x2af   : > { %v1633_v16 = vpack.c.bf16 %v1631_v26, %v1631_v26  ;;  %v2011_v55 = vpop.f32.mrf.mxu1 }
 0x2b0   : > { %2146 = vmatpush.bf16.msrb.mxu0 %v3165_v61 }
 0x2b1   : > { %1971 = vmatmul.bf16.vlgmr.msrb.gmra.mxu2 %v1633_v16  ;;  %1997 = vmatmul.bf16.vlgmr.msra.gmra.mxu0 %v1633_v16 }
 0x2b4   : > { %2147 = vmatpush.bf16.msrb.mxu0 %v3161_v63 }
 0x2b7   : > { %v2013_v38 = vpop.f32.mrf.mxu1 }
 0x2b8   : > { %2148 = vmatpush.bf16.msrb.mxu0 %v3157_v6  ;;  %v3377_v38 = vld [vmem:[%s3885_s7 + $0x10] sm:$0xff] }
 0x2b9   : > { %2238 = vmatpush.bf16.msrb.mxu1 %v3377_v38 }
 0x2ba   : > { %v2037_v12 = vpop.f32.mrf.mxu3 }
 0x2bc   : > { %2149 = vmatpush.bf16.msrb.mxu0 %v3153_v25 }
 0x2bd   : > { %2239 = vmatpush.bf16.msrb.mxu1 %v3376_v2 }
 0x2c0   : > { %2150 = vmatpush.bf16.msrb.mxu0 %v3149_v15 }
 0x2c1   : > { %2023 = vmatmul.bf16.vlgmr.msra.gmra.mxu2 %v1633_v16  ;;  %2240 = vmatpush.bf16.msrb.mxu1 %v3375_v62 }
 0x2c2   : > { %v2039_v33 = vpop.f32.mrf.mxu3 }
 0x2c4   : > { %2151 = vmatpush.bf16.msrb.mxu0 %v3145_v27 }
 0x2c8   : > { %2152 = vmatpush.bf16.msrb.mxu0 %v3141_v28 }
 0x32e   : > { %v1998_v5 = vpop.f32.mrf.mxu0 }
 0x32f   : > { %v1999_v8 = vadd.f32 %v1998_v5, %v1702_v0 }
 0x331   : > { %v2012_v9 = vadd.f32 %v2011_v55, %v1999_v8 }
 0x333   : > { %v3137_v57 = vmul.f32 -1.442695, %v2012_v9 }
 0x334   : > { %v1972_v14 = vpop.f32.mrf.mxu2 }
 0x335   : > { %v1973_v18 = vadd.f32 %v1972_v14, %v1701_v10  ;;  %v3432_v14 = vld [vmem:[%s3886_s8] ss:$0 sm:$0xff] }
 0x336   : > { %v2000_v22 = vpop.f32.mrf.mxu0 }
 0x337   : > { %v1986_v24 = vadd.f32 %v1985_v54, %v1973_v18 }
 0x339   : > { %v3136_v30 = vmul.f32 -1.442695, %v1986_v24 }
 0x33b   : > { %3453 = vpow2.f32 %v3136_v30 }
 0x33c   : > { %v1974_v35 = vpop.f32.mrf.mxu2 }
 0x341   : > { %v3454_v37 = vpop.eup %3453 }
 0x342   : > { %v2044_v41 = vadd.f32 1.0, %v3454_v37 }
 0x344   : > { %3455 = vrcp.f32 %v2044_v41  ;;  %v2024_v43 = vpop.f32.mrf.mxu2  ;;  %v2056_v49 = vand.u32 2147483648, %v2044_v41  ;;  %v2054_v50 = vand.u32 2147483647, %v2044_v41  ;;  %vm2050_vm1 = vweird.f32 %v2044_v41 }
 0x345   : > { %v2025_v45 = vadd.f32 %v2024_v43, %v1703_v4  ;;  %3457 = vpow2.f32 %v3137_v57 }
 0x346   : > { %v2057_v52 = vor.u32 1.1754944e-38, %v2056_v49  ;;  %vm2055_vm3 = vcmp.eq.f32.partialorder %v2054_v50, 8.507059e+37 }
 0x347   : > { %v2038_v46 = vadd.f32 %v2037_v12, %v2025_v45 }
 0x34a   : > { %v3456_v44 = vpop.eup %3455 }
 0x34b   : > { %v2046_v11 = vmul.f32 %v3456_v44, %v2044_v41  ;;  %vm2051_vm0 = vweird.f32 %v3456_v44  ;;  %v3458_v58 = vpop.eup %3457 }
 0x34c   : > { %v2026_v47 = vpop.f32.mrf.mxu2  ;;  %vm2052_vm2 = vmor %vm2050_vm1, %vm2051_vm0  ;;  %v2063_v3 = vadd.f32 1.0, %v3458_v58 }
 0x34d   : > { %v2047_v48 = vsub.f32 1.0, %v2046_v11 }
 0x34e   : > { %3459 = vrcp.f32 %v2063_v3  ;;  %v2075_v0 = vand.u32 2147483648, %v2063_v3  ;;  %vm2069_vm5 = vweird.f32 %v2063_v3  ;;  %v2073_v1 = vand.u32 2147483647, %v2063_v3 }
 0x34f   : > { %v2048_v39 = vmul.f32 %v3456_v44, %v2047_v48 }
 0x350   : > { %v2076_v6 = vor.u32 1.1754944e-38, %v2075_v0  ;;  %vm2074_vm7 = vcmp.eq.f32.partialorder %v2073_v1, 8.507059e+37 }
 0x351   : > { %v2049_v51 = vadd.f32 %v3456_v44, %v2048_v39 }
 0x353   : > { %v2053_v26 = vsel %vm2052_vm2, %v3456_v44, %v2049_v51 }
 0x354   : > { %v2058_v16 = vsel %vm2055_vm3, %v2057_v52, %v2053_v26  ;;  %v3460_v60 = vpop.eup %3459 }
 0x355   : > { %v2079_v54 = vmul.f32 %v2058_v16, %v3811_v53  ;;  %v2065_v61 = vmul.f32 %v3460_v60, %v2063_v3  ;;  %vm2070_vm4 = vweird.f32 %v3460_v60 }
 0x356   : > { %vm2071_vm6 = vmor %vm2069_vm5, %vm2070_vm4 }
 0x357   : > { %v2080_v55 = vpack.c.bf16 %v2079_v54, %v2079_v54  ;;  %v2066_v56 = vsub.f32 1.0, %v2065_v61 }
 0x359   : > { %2153 = vmatmul.bf16.vlgmr.msrb.gmra.mxu0 %v2080_v55  ;;  %v2067_v17 = vmul.f32 %v3460_v60, %v2066_v56 }
 0x35b   : > { %v2068_v63 = vadd.f32 %v3460_v60, %v2067_v17 }
 0x35d   : > { %v2072_v23 = vsel %vm2071_vm6, %v3460_v60, %v2068_v63 }
 0x35e   : > { %v2077_v20 = vsel %vm2074_vm7, %v2076_v6, %v2072_v23 }
 0x35f   : > { %v2160_v8 = vsub.f32 1.0, %v2077_v20 }
 0x361   : > { %v2161_v12 = vmul.f32 %v2160_v8, %v3811_v53 }
 0x3d6   : > { %v2154_v5 = vpop.f32.mrf.mxu0 }
 0x3d7   : > { %v2158_v7 = vadd.f32 %v2154_v5, %v2038_v46 }
 0x3d9   : > { %3461 = vtanh.f32 %v2158_v7 }
 0x3de   : > { %v2156_v25 = vpop.f32.mrf.mxu0 }
 0x3df   : > { %v3462_v9 = vpop.eup %3461 }
 0x3e0   : > { %v2162_v10 = vmul.f32 %v3462_v9, %v2077_v20 }
 0x3e2   : > { %v2163_v13 = vadd.f32 %v2162_v10, %v2161_v12 }
 0x3e4   : > { %v2164_v40 = vpack.c.bf16 %v2163_v13, %v2163_v13  ;;  %2250 = vst [vmem:[%s3890_s12] sm:$0xff] %v2163_v13 }
 0x3e6   : > { %2241 = vmatmul.bf16.vlgmr.msrb.gmra.mxu1 %v2164_v40 }
 0x463   : > { %v2242_v15 = vpop.f32.mrf.mxu1 }
 0x464   : > { %v2243_v18 = vadd.f32 %v3432_v14, %v2242_v15 }
 0x466   : > { %2247 = vst.msk [vmem:[%s3685_s18] sm:$0xff] %vm2246_vm8, %v2243_v18 }
 0x46b   : > { %v2244_v19 = vpop.f32.mrf.mxu1 }
 0x46c PF: > { %s25_s23 = sadd.s32 1, %s3553_s23   ;;  %s3893_s21 = smov %s3549_s22 }
 0x46d   : > { %p22_p9 = scmp.ge.s32.totalorder %s25_s23, 10   ;;  %s3894_s22 = smov %s3896_s25 }
 0x46f   :  { %24 = sbr.rel (!%p22_p9) target bundleno = 3 (0x3), region = 144 }
 0x474   :  { %2318 = vsyncpa [#allocation3], 1 }
 0x475   :  { %2320 = vsyncpa [#allocation3 + $0x1], 1 }
 0x476   :  { %2321 = vsyncpa [#allocation5], 1 }

</bundles_post_ra>
